<compile_context>
chip_gen: v6e
topology: v6e:2x2x1
jax: 0.10.0
libtpu: 0.0.40
codegen_flags: <defaults>
</compile_context>

<pallas_src>
import functools

import jax
import jax.numpy as jnp
from jax import lax
from jax.experimental import pallas as pl
from jax.experimental.pallas import tpu as pltpu


def _round_up(x, m):
    return ((x + m - 1) // m) * m


# ----------------------------------------------------------------------------
# Fused kernel: backbone conv + ReLU + GAP + (pre-folded, packed) heads
# ----------------------------------------------------------------------------
def _fused_clsnet_kernel(x_ref, wconv_ref, bconv_ref, whead_ref, bhead_ref,
                         out_ref, acc_ref, *, H, W, C, row_chunk):
    """One grid step = (one batch row b, one input/backbone i).

    x_ref     : (Hp, Wp, C)   bf16  padded NHWC image of sample b, input i
    wconv_ref : (9*C, NF)     bf16  conv weight, rows ordered (tap, channel)
    bconv_ref : (1, NF)       f32   conv bias (zero-padded to NF lanes)
    whead_ref : (NF, NCOL)    f32   packed, pre-folded head weight slice of backbone i
    bhead_ref : (1, NCOL)     f32   packed head bias (b1 @ W2 + b2, all heads)
    out_ref   : (1, 1, NCOL)  f32   packed logits of sample b (written on last i)
    acc_ref   : (1, NCOL)     f32   logits accumulator (persists across the i axis)
    """
    i = pl.program_id(1)
    n_inputs = pl.num_programs(1)

    @pl.when(i == 0)
    def _init():
        acc_ref[...] = bhead_ref[...]          # start from the fused head bias

    # Load once; do layout-heavy im2col slicing in f32 (robust on all gens),
    # then hand bf16 operands to the MXU (f32 accumulation).
    x = x_ref[...].astype(jnp.float32)         # (Hp, Wp, C)
    wconv = wconv_ref[...]                     # (9C, NF) bf16
    nf = wconv.shape[1]

    n_chunks = H // row_chunk
    feat_sum = jnp.zeros((1, nf), jnp.float32)
    for rc in range(n_chunks):                 # static loop; bounds VMEM intermediate
        r0 = rc * row_chunk
        # in-VMEM im2col: 9 shifted views -> (RC, W, 9C), columns ordered (tap, c)
        cols = [x[r0 + dh:r0 + dh + row_chunk, dw:dw + W, :]
                for dh in range(3) for dw in range(3)]
        patches = jnp.concatenate(cols, axis=-1)
        patches = patches.reshape(row_chunk * W, 9 * C)          # 2-D MXU operand
        conv = jnp.dot(patches.astype(jnp.bfloat16), wconv,
                       preferred_element_type=jnp.float32)       # (RC*W, NF)
        act = jnp.maximum(conv + bconv_ref[...], 0.0)            # bias + ReLU
        feat_sum = feat_sum + jnp.sum(act, axis=0, keepdims=True)

    feat = feat_sum * (1.0 / float(H * W))     # global average pool -> (1, NF)

    # Heads: fc2(fc1(.)) pre-folded to a single matmul, all heads packed in NCOL lanes.
    acc_ref[...] += jnp.dot(feat, whead_ref[...],
                            preferred_element_type=jnp.float32)

    @pl.when(i == n_inputs - 1)
    def _finalize():
        out_ref[0] = acc_ref[...]


@functools.partial(jax.jit, static_argnames=("H", "W", "C", "row_chunk"))
def _clsnet_forward_pallas(x_all, w_conv, b_conv, w_head, b_head, *,
                           H, W, C, row_chunk):
    NI, B, Hp, Wp, _ = x_all.shape
    NF = w_conv.shape[-1]
    NCOL = w_head.shape[-1]

    kernel = functools.partial(_fused_clsnet_kernel,
                               H=H, W=W, C=C, row_chunk=row_chunk)

    flops = 2 * B * NI * H * W * (9 * C) * NF + 2 * B * NI * NF * NCOL
    bytes_accessed = (x_all.size * x_all.dtype.itemsize
                      + w_conv.size * w_conv.dtype.itemsize
                      + b_conv.size * 4 + w_head.size * 4 + b_head.size * 4
                      + B * NCOL * 4)

    out = pl.pallas_call(
        kernel,
        out_shape=jax.ShapeDtypeStruct((B, 1, NCOL), jnp.float32),
        grid_spec=pltpu.PrefetchScalarGridSpec(
            num_scalar_prefetch=0,
            grid=(B, NI),   # batch parallel; inputs = logits-reduction axis (last)
            in_specs=[
                pl.BlockSpec((pl.Squeezed(), pl.Squeezed(), Hp, Wp, C),
                             lambda b, i: (i, b, 0, 0, 0)),
                pl.BlockSpec((pl.Squeezed(), 9 * C, NF), lambda b, i: (i, 0, 0)),
                pl.BlockSpec((pl.Squeezed(), 1, NF), lambda b, i: (i, 0, 0)),
                pl.BlockSpec((pl.Squeezed(), NF, NCOL), lambda b, i: (i, 0, 0)),
                pl.BlockSpec((1, NCOL), lambda b, i: (0, 0)),
            ],
            out_specs=pl.BlockSpec((1, 1, NCOL), lambda b, i: (b, 0, 0)),
            scratch_shapes=[pltpu.VMEM((1, NCOL), jnp.float32)],
        ),
        compiler_params=pltpu.CompilerParams(
            dimension_semantics=("parallel", "arbitrary"),
            vmem_limit_bytes=32 * 1024 * 1024,
        ),
        cost_estimate=pl.CostEstimate(flops=flops, transcendentals=0,
                                      bytes_accessed=bytes_accessed),
    )(x_all, w_conv, b_conv, w_head, b_head)
    return out.reshape(B, NCOL)


# ----------------------------------------------------------------------------
# ClsNet (JAX / Pallas)
# ----------------------------------------------------------------------------
class ClsNetPallas:
    """Mirror of ClsNet.forward with one fused Pallas kernel per forward."""

    def __init__(self, in_channels, heads, feature_dim=32, share_weight=False,
                 seed=0, row_chunk=None):
        self.in_channels = list(in_channels)
        self.heads = list(heads)
        self.share_weight = share_weight
        self.feature_dim = feature_dim
        self.n_inputs = len(in_channels)
        self.feature_dims = [feature_dim] * self.n_inputs
        self.c_max = max(self.in_channels)
        self.nf = _round_up(feature_dim, 128)        # lane-dense feature width
        self.row_chunk = row_chunk                   # set a divisor of H for big images

        key = jax.random.PRNGKey(seed)

        # --- backbone params (conv3x3 s1 p1 + ReLU + GAP stand-in) ----------
        # TODO(synk): real backbones come from the external BACKBONES registry.
        n_backbones = 1 if share_weight else self.n_inputs
        self.conv_w = []   # (9, Cin, feature_dim) bf16, rows ordered (tap, channel)
        self.conv_b = []   # (1, feature_dim) f32
        for k in range(n_backbones):
            cin = self.in_channels[0] if share_weight else self.in_channels[k]
            key, kw, kb = jax.random.split(key, 3)
            w = (jax.random.normal(kw, (9, cin, feature_dim), jnp.float32)
                 * 0.05).astype(jnp.bfloat16)
            b = jax.random.normal(kb, (1, feature_dim), jnp.float32) * 0.01
            self.conv_w.append(w)
            self.conv_b.append(b)

        # --- head params: fc1 (F,256), fc2 (256, n_cls) ----------------------
        self.head_params = []
        self.head_col_offsets = []
        col = 0
        for (bb_idx, n_cls) in self.heads:
            fdim = sum(self.feature_dims[j] for j in bb_idx)
            key, k1, k2, k3, k4 = jax.random.split(key, 5)
            w1 = jax.random.normal(k1, (fdim, 256), jnp.float32) * 0.05
            b1 = jax.random.normal(k2, (1, 256), jnp.float32) * 0.01
            w2 = jax.random.normal(k3, (256, n_cls), jnp.float32) * 0.05
            b2 = jax.random.normal(k4, (1, n_cls), jnp.float32) * 0.01
            self.head_params.append((w1, b1, w2, b2))
            self.head_col_offsets.append(col)
            col += n_cls
        self.ncol = _round_up(max(col, 1), 128)      # lane-dense packed logits slab

        self._build_packed_params()

    def _build_packed_params(self):
        NI, Cm, NF, NCOL = self.n_inputs, self.c_max, self.nf, self.ncol
        fd = self.feature_dim
        hi = lax.Precision.HIGHEST

        # conv weights: channels zero-padded to Cm, features zero-padded to NF lanes
        w_conv = jnp.zeros((NI, 9 * Cm, NF), jnp.float32)
        b_conv = jnp.zeros((NI, 1, NF), jnp.float32)
        for i in range(NI):
            k = 0 if self.share_weight else i
            w = self.conv_w[k].astype(jnp.float32)                 # (9, cin, fd)
            cin = w.shape[1]
            w_pad = jnp.zeros((9, Cm, fd), jnp.float32).at[:, :cin, :].set(w)
            w_conv = w_conv.at[i, :, :fd].set(w_pad.reshape(9 * Cm, fd))
            b_conv = b_conv.at[i, 0, :fd].set(self.conv_b[k][0])
        self.w_conv_packed = w_conv.astype(jnp.bfloat16)
        self.b_conv_packed = b_conv

        # heads: fold fc1@fc2 (exact: no nonlinearity) and pack ALL heads into one
        # lane-dense slab; backbone j contributes rows [:fd] of w_head[j].
        w_head = jnp.zeros((NI, NF, NCOL), jnp.float32)
        b_head = jnp.zeros((1, NCOL), jnp.float32)
        for h, (bb_idx, n_cls) in enumerate(self.heads):
            w1, b1, w2, b2 = self.head_params[h]
            wf = jnp.dot(w1, w2, precision=hi)                     # (fdim, n_cls)
            bf = jnp.dot(b1, w2, precision=hi) + b2                # (1, n_cls)
            c0 = self.head_col_offsets[h]
            for k_pos, j in enumerate(bb_idx):
                blk = wf[k_pos * fd:(k_pos + 1) * fd, :]
                w_head = w_head.at[j, :fd, c0:c0 + n_cls].add(blk)
            b_head = b_head.at[0, c0:c0 + n_cls].add(bf[0])
        self.w_head_packed = w_head
        self.b_head_packed = b_head

    def __call__(self, *inputs, indices=None):
        assert len(inputs) == self.n_inputs
        B, _, H, W = inputs[0].shape
        # TODO(synk): inputs with differing spatial sizes would need per-input calls.
        x_stack = []
        for i, x in enumerate(inputs):
            assert x.shape[0] == B and x.shape[2:] == (H, W)
            assert x.shape[1] == self.in_channels[i]
            xh = jnp.transpose(x, (0, 2, 3, 1))                    # NCHW -> NHWC
            xh = jnp.pad(xh, ((0, 0), (1, 1), (1, 1),
                              (0, self.c_max - x.shape[1])))       # spatial + channel pad
            x_stack.append(xh.astype(jnp.bfloat16))
        x_all = jnp.stack(x_stack, axis=0)                         # (NI, B, Hp, Wp, Cm)

        rc = self.row_chunk if self.row_chunk is not None else H
        assert H % rc == 0

        slab = _clsnet_forward_pallas(
            x_all, self.w_conv_packed, self.b_conv_packed,
            self.w_head_packed, self.b_head_packed,
            H=H, W=W, C=self.c_max, row_chunk=rc)                  # (B, NCOL)

        # All heads' logits come out packed in one slab; slicing is free.
        def head_out(h):
            c0 = self.head_col_offsets[h]
            n_cls = self.heads[h][1]
            return slab[:, c0:c0 + n_cls]

        if indices is None:
            return [head_out(h) for h in range(len(self.heads))]
        if isinstance(indices, list):
            return [head_out(h) for h in indices]
        return head_out(indices)


# ----------------------------------------------------------------------------
# Reference (plain JAX, mirrors the original module: conv->ReLU->GAP, fc1->fc2)
# ----------------------------------------------------------------------------
def _ref_forward(net, inputs):
    hi = lax.Precision.HIGHEST
    feats = []
    for i, x in enumerate(inputs):
        k = 0 if net.share_weight else i
        w = net.conv_w[k].astype(jnp.float32)                      # (9, cin, fd)
        b = net.conv_b[k]
        cin = w.shape[1]
        xh = jnp.transpose(x, (0, 2, 3, 1)).astype(jnp.bfloat16).astype(jnp.float32)
        Bsz, H, W, _ = xh.shape
        xp = jnp.pad(xh, ((0, 0), (1, 1), (1, 1), (0, 0)))
        cols = [xp[:, dh:dh + H, dw:dw + W, :] for dh in range(3) for dw in range(3)]
        patches = jnp.concatenate(cols, axis=-1).reshape(Bsz, H * W, 9 * cin)
        conv = jnp.einsum("bpk,kf->bpf", patches, w.reshape(9 * cin, -1),
                          precision=hi) + b[None]
        feats.append(jnp.mean(jnp.maximum(conv, 0.0), axis=1))
    outs = []
    for (bb_idx, _), (w1, b1, w2, b2) in zip(net.heads, net.head_params):
        tot = jnp.concatenate([feats[j] for j in bb_idx], axis=1)
        h1 = jnp.dot(tot, w1, precision=hi) + b1
        outs.append(jnp.dot(h1, w2, precision=hi) + b2)
    return outs


if __name__ == "__main__":
    key = jax.random.PRNGKey(0)
    k1, k2 = jax.random.split(key)
    # Two inputs (two backbones), NCHW as in PyTorch.
    x1 = jax.random.normal(k1, (2, 4, 16, 16), jnp.float32)
    x2 = jax.random.normal(k2, (2, 3, 16, 16), jnp.float32)

    # heads: head1 uses concat of both backbones -> 5 classes,
    #        head2 uses backbone 1 only          -> 3 classes
    heads = [([0, 1], 5), ([1], 3)]
    net = ClsNetPallas(in_channels=[4, 3], heads=heads, feature_dim=32, seed=0)

    y_list = net(x1, x2)
    y_list = jax.block_until_ready(y_list)

    # sanity check against plain-JAX reference (un-fused heads)
    ref = _ref_forward(net, [x1, x2])
    for y, r in zip(y_list, ref):
        assert y.shape == r.shape, (y.shape, r.shape)
        assert jnp.allclose(y, r, atol=1e-3, rtol=1e-2), float(jnp.max(jnp.abs(y - r)))

    assert y_list[0].shape == (2, 5)
    assert y_list[1].shape == (2, 3)

    # exercise the `indices` paths of the original module
    y_single = net(x1, x2, indices=1)
    y_subset = net(x1, x2, indices=[0])
    jax.block_until_ready((y_single, y_subset))
    assert y_single.shape == (2, 3)
    assert jnp.allclose(y_single, ref[1], atol=1e-3, rtol=1e-2)
    assert jnp.allclose(y_subset[0], ref[0], atol=1e-3, rtol=1e-2)

    print("KERNEL_OK")
</pallas_src>

<mosaic_0001>
module attributes {stable_mosaic.version = 11 : i64} {
  func.func @_fused_clsnet_kernel(%arg0: i32, %arg1: i32, %arg2: memref<1x1x18x18x4xbf16, #tpu.memory_space<vmem>>, %arg3: memref<1x36x128xbf16, #tpu.memory_space<vmem>>, %arg4: memref<1x1x128xf32, #tpu.memory_space<vmem>>, %arg5: memref<1x128x128xf32, #tpu.memory_space<vmem>>, %arg6: memref<1x128xf32, #tpu.memory_space<vmem>>, %arg7: memref<1x1x128xf32, #tpu.memory_space<vmem>>, %arg8: memref<1x128xf32, #tpu.memory_space<vmem>>) attributes {dimension_semantics = [#tpu.dimension_semantics<parallel>, #tpu.dimension_semantics<arbitrary>], iteration_bounds = array<i64: 2, 2>, scalar_prefetch = 0 : i64, scratch_operands = 1 : i64, tpu.core_type = #tpu.core_type<tc>, window_params = [{transform_indices = @transform_0, window_bounds = array<i64: 1, 1, 18, 18, 4>}, {transform_indices = @transform_1, window_bounds = array<i64: 1, 36, 128>}, {transform_indices = @transform_2, window_bounds = array<i64: 1, 1, 128>}, {transform_indices = @transform_3, window_bounds = array<i64: 1, 128, 128>}, {pipeline_mode = #tpu.pipeline_mode<synchronous>, transform_indices = @transform_4, window_bounds = array<i64: 1, 128>}, {transform_indices = @transform_5, window_bounds = array<i64: 1, 1, 128>}]} {
    %c0_i32 = arith.constant 0 : i32
    %0 = arith.cmpi eq, %arg1, %c0_i32 : i32
    %1 = arith.extui %0 : i1 to i32
    %c0_i32_0 = arith.constant 0 : i32
    %2 = arith.cmpi ne, %1, %c0_i32_0 : i32
    scf.if %2 {
      %c0_24 = arith.constant 0 : index
      %c0_25 = arith.constant 0 : index
      %42 = vector.load %arg6[%c0_24, %c0_25] : memref<1x128xf32, #tpu.memory_space<vmem>>, vector<1x128xf32>
      %c0_26 = arith.constant 0 : index
      %c0_27 = arith.constant 0 : index
      %43 = vector.load %arg8[%c0_26, %c0_27] : memref<1x128xf32, #tpu.memory_space<vmem>>, vector<1x128xf32>
      tpu.vector_store %arg8[%c0_26, %c0_27], %42 {strides = array<i32>} : memref<1x128xf32, #tpu.memory_space<vmem>>, vector<1x128xf32>,
    } else {
    }
    %c0 = arith.constant 0 : index
    %c0_1 = arith.constant 0 : index
    %c0_2 = arith.constant 0 : index
    %c0_3 = arith.constant 0 : index
    %c0_4 = arith.constant 0 : index
    %3 = vector.load %arg2[%c0, %c0_1, %c0_2, %c0_3, %c0_4] : memref<1x1x18x18x4xbf16, #tpu.memory_space<vmem>>, vector<1x1x18x18x4xbf16>
    %4 = vector.shape_cast %3 : vector<1x1x18x18x4xbf16> to vector<18x18x4xbf16>
    %5 = arith.extf %4 : vector<18x18x4xbf16> to vector<18x18x4xf32>
    %c0_5 = arith.constant 0 : index
    %c0_6 = arith.constant 0 : index
    %c0_7 = arith.constant 0 : index
    %6 = vector.load %arg3[%c0_5, %c0_6, %c0_7] : memref<1x36x128xbf16, #tpu.memory_space<vmem>>, vector<1x36x128xbf16>
    %7 = vector.shape_cast %6 : vector<1x36x128xbf16> to vector<36x128xbf16>
    %cst = arith.constant 0.000000e+00 : f32
    %8 = vector.broadcast %cst : f32 to vector<1x128xf32>
    %9 = vector.extract_strided_slice %5 {offsets = [0, 0, 0], sizes = [16, 16, 4], strides = [1, 1, 1]} : vector<18x18x4xf32> to vector<16x16x4xf32>
    %10 = vector.extract_strided_slice %5 {offsets = [0, 1, 0], sizes = [16, 16, 4], strides = [1, 1, 1]} : vector<18x18x4xf32> to vector<16x16x4xf32>
    %11 = vector.extract_strided_slice %5 {offsets = [0, 2, 0], sizes = [16, 16, 4], strides = [1, 1, 1]} : vector<18x18x4xf32> to vector<16x16x4xf32>
    %12 = vector.extract_strided_slice %5 {offsets = [1, 0, 0], sizes = [16, 16, 4], strides = [1, 1, 1]} : vector<18x18x4xf32> to vector<16x16x4xf32>
    %13 = vector.extract_strided_slice %5 {offsets = [1, 1, 0], sizes = [16, 16, 4], strides = [1, 1, 1]} : vector<18x18x4xf32> to vector<16x16x4xf32>
    %14 = vector.extract_strided_slice %5 {offsets = [1, 2, 0], sizes = [16, 16, 4], strides = [1, 1, 1]} : vector<18x18x4xf32> to vector<16x16x4xf32>
    %15 = vector.extract_strided_slice %5 {offsets = [2, 0, 0], sizes = [16, 16, 4], strides = [1, 1, 1]} : vector<18x18x4xf32> to vector<16x16x4xf32>
    %16 = vector.extract_strided_slice %5 {offsets = [2, 1, 0], sizes = [16, 16, 4], strides = [1, 1, 1]} : vector<18x18x4xf32> to vector<16x16x4xf32>
    %17 = vector.extract_strided_slice %5 {offsets = [2, 2, 0], sizes = [16, 16, 4], strides = [1, 1, 1]} : vector<18x18x4xf32> to vector<16x16x4xf32>
    %18 = tpu.concatenate %9, %10, %11, %12, %13, %14, %15, %16, %17 in 2 : vector<16x16x4xf32>, vector<16x16x4xf32>, vector<16x16x4xf32>, vector<16x16x4xf32>, vector<16x16x4xf32>, vector<16x16x4xf32>, vector<16x16x4xf32>, vector<16x16x4xf32>, vector<16x16x4xf32> -> vector<16x16x36xf32>
    %19 = vector.shape_cast %18 : vector<16x16x36xf32> to vector<256x36xf32>
    %20 = arith.truncf %19 : vector<256x36xf32> to vector<256x36xbf16>
    %cst_8 = arith.constant dense<0.000000e+00> : vector<256x128xf32>
    %21 = tpu.matmul %20, %7, %cst_8 {dimension_numbers = #tpu.dot_dimension_numbers<[1], [0], [0], [1], [0, 0, 1, 1], [], []>} : vector<256x36xbf16>, vector<36x128xbf16>, vector<256x128xf32> -> vector<256x128xf32>
    %c0_9 = arith.constant 0 : index
    %c0_10 = arith.constant 0 : index
    %c0_11 = arith.constant 0 : index
    %22 = vector.load %arg4[%c0_9, %c0_10, %c0_11] : memref<1x1x128xf32, #tpu.memory_space<vmem>>, vector<1x1x128xf32>
    %23 = vector.shape_cast %22 : vector<1x1x128xf32> to vector<1x128xf32>
    %24 = vector.broadcast %23 : vector<1x128xf32> to vector<256x128xf32>
    %25 = arith.addf %21, %24 : vector<256x128xf32>
    %cst_12 = arith.constant 0.000000e+00 : f32
    %26 = vector.broadcast %cst_12 : f32 to vector<256x128xf32>
    %27 = arith.maximumf %25, %26 : vector<256x128xf32>
    %cst_13 = arith.constant dense<0.000000e+00> : vector<128xf32>
    %28 = vector.multi_reduction <add>, %27, %cst_13 [0] : vector<256x128xf32> to vector<128xf32>
    %29 = vector.shape_cast %28 : vector<128xf32> to vector<1x128xf32>
    %30 = arith.addf %8, %29 : vector<1x128xf32>
    %cst_14 = arith.constant 3.906250e-03 : f32
    %31 = vector.broadcast %cst_14 : f32 to vector<1x128xf32>
    %32 = arith.mulf %30, %31 : vector<1x128xf32>
    %c0_15 = arith.constant 0 : index
    %c0_16 = arith.constant 0 : index
    %33 = vector.load %arg8[%c0_15, %c0_16] : memref<1x128xf32, #tpu.memory_space<vmem>>, vector<1x128xf32>
    %c0_17 = arith.constant 0 : index
    %c0_18 = arith.constant 0 : index
    %c0_19 = arith.constant 0 : index
    %34 = vector.load %arg5[%c0_17, %c0_18, %c0_19] : memref<1x128x128xf32, #tpu.memory_space<vmem>>, vector<1x128x128xf32>
    %35 = vector.shape_cast %34 : vector<1x128x128xf32> to vector<128x128xf32>
    %cst_20 = arith.constant dense<0.000000e+00> : vector<1x128xf32>
    %36 = tpu.matmul %32, %35, %cst_20 {dimension_numbers = #tpu.dot_dimension_numbers<[1], [0], [0], [1], [0, 0, 1, 1], [], []>} : vector<1x128xf32>, vector<128x128xf32>, vector<1x128xf32> -> vector<1x128xf32>
    %37 = arith.addf %33, %36 : vector<1x128xf32>
    %c0_21 = arith.constant 0 : index
    %c0_22 = arith.constant 0 : index
    %38 = vector.load %arg8[%c0_21, %c0_22] : memref<1x128xf32, #tpu.memory_space<vmem>>, vector<1x128xf32>
    tpu.vector_store %arg8[%c0_21, %c0_22], %37 {strides = array<i32>} : memref<1x128xf32, #tpu.memory_space<vmem>>, vector<1x128xf32>,
    %c1_i32 = arith.constant 1 : i32
    %39 = arith.cmpi eq, %arg1, %c1_i32 : i32
    %40 = arith.extui %39 : i1 to i32
    %c0_i32_23 = arith.constant 0 : i32
    %41 = arith.cmpi ne, %40, %c0_i32_23 : i32
    scf.if %41 {
      %c0_24 = arith.constant 0 : index
      %c0_25 = arith.constant 0 : index
      %42 = vector.load %arg8[%c0_24, %c0_25] : memref<1x128xf32, #tpu.memory_space<vmem>>, vector<1x128xf32>
      %c0_26 = arith.constant 0 : index
      %c0_27 = arith.constant 0 : index
      %c0_28 = arith.constant 0 : index
      %43 = vector.load %arg7[%c0_26, %c0_27, %c0_28] : memref<1x1x128xf32, #tpu.memory_space<vmem>>, vector<1x1x128xf32>
      %44 = vector.shape_cast %43 : vector<1x1x128xf32> to vector<1x128xf32>
      %45 = vector.shape_cast %42 : vector<1x128xf32> to vector<1x1x128xf32>
      tpu.vector_store %arg7[%c0_26, %c0_27, %c0_28], %45 {strides = array<i32>} : memref<1x1x128xf32, #tpu.memory_space<vmem>>, vector<1x1x128xf32>,
    } else {
    }
    return
  }
  func.func @transform_0(%arg0: i32, %arg1: i32) -> (i32, i32, i32, i32, i32) {
    %c0_i32 = arith.constant 0 : i32
    %c0_i32_0 = arith.constant 0 : i32
    %c0_i32_1 = arith.constant 0 : i32
    %c0_i32_2 = arith.constant 0 : i32
    return %arg1, %arg0, %c0_i32, %c0_i32_0, %c0_i32_1 : i32, i32, i32, i32, i32
  }
  func.func @transform_1(%arg0: i32, %arg1: i32) -> (i32, i32, i32) {
    %c0_i32 = arith.constant 0 : i32
    %c0_i32_0 = arith.constant 0 : i32
    %c0_i32_1 = arith.constant 0 : i32
    return %arg1, %c0_i32, %c0_i32_0 : i32, i32, i32
  }
  func.func @transform_2(%arg0: i32, %arg1: i32) -> (i32, i32, i32) {
    %c0_i32 = arith.constant 0 : i32
    %c0_i32_0 = arith.constant 0 : i32
    %c0_i32_1 = arith.constant 0 : i32
    return %arg1, %c0_i32, %c0_i32_0 : i32, i32, i32
  }
  func.func @transform_3(%arg0: i32, %arg1: i32) -> (i32, i32, i32) {
    %c0_i32 = arith.constant 0 : i32
    %c0_i32_0 = arith.constant 0 : i32
    %c0_i32_1 = arith.constant 0 : i32
    return %arg1, %c0_i32, %c0_i32_0 : i32, i32, i32
  }
  func.func @transform_4(%arg0: i32, %arg1: i32) -> (i32, i32) {
    %c0_i32 = arith.constant 0 : i32
    %c0_i32_0 = arith.constant 0 : i32
    %c0_i32_1 = arith.constant 0 : i32
    return %c0_i32, %c0_i32_0 : i32, i32
  }
  func.func @transform_5(%arg0: i32, %arg1: i32) -> (i32, i32, i32) {
    %c0_i32 = arith.constant 0 : i32
    %c0_i32_0 = arith.constant 0 : i32
    %c0_i32_1 = arith.constant 0 : i32
    return %arg0, %c0_i32, %c0_i32_0 : i32, i32, i32
  }
}

</mosaic_0001>

<bundles_post_ra>
// kernel: _clsnet_forward_pallas.1
= control target key start
LH: loop header
LB: loop body
LE: loop exit
PB: predicated region body
PF: predicated region fallthrough
CT: control target
= control target key end

     0   :  { %10 = vsyncpa [#allocation4], 0  ;;  %s4563_s0 = inlined_call_operand.vmem [shape: bf16[2,2,18,18,4], index: 0, kind: input, shape index: {}]   ;;  %s4564_s1 = inlined_call_operand.vmem [shape: bf16[2,36,128], index: 1, kind: input, shape index: {}]   ;;  %s4565_s2 = inlined_call_operand.vmem [shape: f32[2,1,128], index: 2, kind: input, shape index: {}]   ;;  %s4566_s3 = inlined_call_operand.vmem [shape: f32[2,128,128], index: 3, kind: input, shape index: {}]   ;;  %s4567_s4 = inlined_call_operand.vmem [shape: f32[1,128], index: 4, kind: input, shape index: {}]   ;;  %s4568_s5 = inlined_call_operand.hbm [shape: f32[2,1,128], index: 5, kind: output, shape index: {}]  }
   0x1   :  { %12 = vsyncpa [#allocation4 + $0x1], 0  ;;  %s3287_s18 = smov 0   ;;  %s3289_s19 = smov 0  }
   0x2   :  { %s3291_s20 = smov 0   ;;  %s3293_s21 = smov 0  }
   0x3   :  { %s3295_s22 = smov 0   ;;  %s3297_s23 = smov 0  }
   0x4   :  { %s3299_s24 = smov 0   ;;  %s3301_s25 = smov 0  }
   0x5 LB: > { %4574 = sst [smem:[#allocation6_spill]] %s3224_s20  ;;  %s2229_s26 = sadd.s32 4294967295, %s3244_s25   ;;  %s3244_s25 = sphi %s3301_s25, %s18_s25   ;;  %s3240_s24 = sphi %s3299_s24, %s4591_s24   ;;  %s3236_s23 = sphi %s3297_s23, %s4590_s23   ;;  %s3232_s22 = sphi %s3295_s22, %s4589_s22   ;;  %s3228_s21 = sphi %s3293_s21, %s4588_s21   ;;  %s3224_s20 = sphi %s3291_s20, %s4587_s20   ;;  %s3220_s19 = sphi %s3289_s19, %s4593_s19   ;;  %s3216_s18 = sphi %s3287_s18, %s4592_s18  }
   0x6   : > { %4575 = sst [smem:[#allocation7_spill]] %s3236_s23  ;;  %s2230_s27 = sadd.s32 4294967294, %s3244_s25  }
   0x7   : > { %4576 = sst [smem:[#allocation8_spill]] %s3240_s24  ;;  %s27_s28 = sadd.s32 1, %s3236_s23 }
   0x8   : > { %p28_p0 = scmp.ge.s32.totalorder %s27_s28, 2  ;;  %s30_s29 = sadd.s32 1, %s3240_s24 }
   0x9   : > { %p174_p1 = scmp.ne.s32.totalorder %s3224_s20, %s3220_s19  ;;  %p175_p2 = scmp.eq.s32.totalorder %s2229_s26, 3 }
   0xa   : > { %s4595_s28 = smov (%p28_p0, %s27_s28), 0  ;;  %s4597_s29 = smov (!%p28_p0, %s30_s29), %s3240_s24 }
   0xb   : > { %4577 = sst [smem:[#allocation9_spill]] %s4595_s28  ;;  %p3336_p3 = por %p175_p2, %p174_p1 }
   0xc   : > { %p180_p4 = scmp.ne.s32.totalorder %s3220_s19, %s3216_s18  ;;  %p32_p5 = scmp.ge.s32.totalorder %s4597_s29, 2 }
   0xd   : > { %p181_p6 = scmp.eq.s32.totalorder %s2230_s27, 3  ;;  %p2233_p7 = scmp.ge.s32.totalorder %s3244_s25, 1 }
   0xe   : > { %p236_p8 = scmp.lt.s32.totalorder %s3244_s25, 5  ;;  %s4599_s29 = smov (%p32_p5, %s4597_s29), 0 }
   0xf   : > { %4579 = sst [smem:[#allocation10_spill]] %s4599_s29  ;;  %p3346_p9 = por %p181_p6, %p180_p4 }
  0x10   : > { %p237_p10 = pnand %p2233_p7, %p236_p8  ;;  %s161_s7 = ssub.s32 %s3240_s24, %s4599_s29 }
  0x11   : > { %s4580_s6 = scalar_select %p3346_p9, 1, 0 }
  0x12   : > { %s164_s8 = sadd.s32 1, %s3224_s20  ;;  %p162_p11 = scmp.eq.s32.totalorder %s161_s7, 0 }
  0x13   : > { %4581 = sst [smem:[#allocation11_spill]] %s4580_s6  ;;  %240 = sbr.rel (%p237_p10) target bundleno = 872 (0x368), region = 40 }
  0x14   : > { %s3354_s9 = scalar_select %p162_p11, %s3224_s20, %s164_s8  }
  0x15   : > { %p280_p12 = scmp.lt.s32.totalorder (!%p237_p10), %s3228_s21, 1  ;;  %p282_p13 = scmp.lt.s32.totalorder (!%p237_p10), %s3232_s22, 1 }
  0x16   : > { %4582 = sst [smem:[#allocation12_spill]] %s3354_s9  ;;  %p2238_p0 = scmp.ne.s32.totalorder (!%p237_p10), %s3228_s21, 0 }
  0x18   : > { %s3360_s11 = scalar_select %p280_p12, %s3228_s21, 1 }
  0x19   : > { %s283_s12 = scalar_select %p282_p13, %s3232_s22, 1 }
  0x1a   : > { %s2426_s13 = smul.u32 108, %s3360_s11  ;;  %s296_s16 = scalar_lea.vmem %s4565_s2, %s3360_s11 }
  0x1b   : > { %s2425_s17 = smul.u32 54, %s283_s12  ;;  %s2263_s26 = sshll.u32 %s3360_s11, 7 }
  0x1c   : > { %s2427_s27 = smul.u32 20, %s3360_s11  ;;  %s3373_s10 = scalar_lea.vmem %s4566_s3, %s2263_s26 }
  0x1d   : > { %s286_s29 = sadd.s32 %s2426_s13, %s2425_s17  ;;  %s4583_s12 = sand.u32 1, %s3220_s19  }
  0x1e   : > { %s2234_s28 = sshll.u32 %s286_s29, 2  ;;  %s3378_s9 = scalar_lea.vmem %s4564_s1, %s2427_s27 }
  0x1f   : > { %s3383_s14 = scalar_lea.vmem %s4563_s0, %s2234_s28  ;;  %s3387_s15 = scalar_lea.vmem [#allocation3], %s4583_s12 }
  0x20   : > { %306 = sbr.rel (%p2238_p0) target bundleno = 39 (0x27), region = 44 }
  0x25   : > { %v307_v0 = vld [vmem:[%s4567_s4] sm:$0x1] }
  0x26   : > { %308 = vst [vmem:[#allocation2] sm:$0x1] %v307_v0 }
  0x27 PF: > { %v2265_v1 = vld [vmem:[%s3383_s14] sm:$0xff]   ;;  %v311_v2 = vld [vmem:[%s3383_s14 + $0x8] sm:$0x1]  ;;  %vm647_vm0 = vcmask 1045504   ;;  %vm470_vm1 = vcmask 1046528   ;;  %v312_v6 = vld [vmem:[%s3383_s14 + $0xc] sm:$0xff]  }
  0x28   : > { %v3395_v3 = vunpack.c.l.bf16 %v2265_v1  ;;  %v3397_v4 = vunpack.c.h.bf16 %v2265_v1  ;;  %v365_v5 = vunpack.c.l.bf16 %v311_v2  ;;  %v314_v7 = vld [vmem:[%s3383_s14 + $0x14] sm:$0x1]  ;;  %v2300_v8 = vld [vmem:[%s3383_s14 + $0x18] sm:$0xff]   ;;  %v3402_v9 = vunpack.c.l.bf16 %v312_v6  ;;  %v317_v25 = vld [vmem:[%s3383_s14 + $0x20] sm:$0x1]  ;;  %s3246_s20 = smov 8  }
  0x29   : > { %v3404_v10 = vunpack.c.h.bf16 %v312_v6  ;;  %v368_v11 = vunpack.c.l.bf16 %v314_v7  ;;  %v3406_v12 = vunpack.c.l.bf16 %v2300_v8  ;;  %v3424_v35 = vunpack.c.h.bf16 %v2300_v8  ;;  %s3247_s23 = smov 4   ;;  %v318_v50 = vld [vmem:[%s3383_s14 + $0x24] sm:$0xff]   ;;  %v320_v51 = vld [vmem:[%s3383_s14 + $0x2c] sm:$0x1]  ;;  %s3248_s24 = smov 12  }
  0x2a   : > { %v648_v13 = vrot.slane %v3395_v3, 2  ;;  %v649_v14 = vrot.slane %v3397_v4, 2  ;;  %v651_v15 = vrot.slane %v365_v5, 2  ;;  %v471_v16 = vrot.slane %v3395_v3, 1  ;;  %s3249_s28 = smov 16   ;;  %s3250_s29 = smov 20  }
  0x2b   : > { %v472_v17 = vrot.slane %v3397_v4, 1  ;;  %v474_v18 = vrot.slane %v365_v5, 1  ;;  %v653_v19 = vrot.slane %v3402_v9, 2  ;;  %v654_v20 = vrot.slane %v3404_v10, 2  ;;  %s3251_s6 = smov 24   ;;  %s3252_s13 = smov 28  }
  0x2c   : > { %v650_v21 = vsel %vm647_vm0, %v648_v13, %v649_v14  ;;  %v652_v22 = vsel %vm647_vm0, %v649_v14, %v651_v15  ;;  %v656_v23 = vrot.slane %v368_v11, 2  ;;  %v476_v24 = vrot.slane %v3402_v9, 1  ;;  %v323_v13 = vld [vmem:[%s3383_s14 + $0x38] sm:$0x1]  ;;  %s3253_s17 = smov 32   ;;  %p2259_p1 = scmp.ne.s32.totalorder %s3228_s21, 1 }
  0x2d   : > { %v2524_v26 = vpack.i.bf16 %v652_v22, %v650_v21  ;;  %v473_v27 = vsel %vm470_vm1, %v471_v16, %v472_v17  ;;  %v475_v28 = vsel %vm470_vm1, %v472_v17, %v474_v18  ;;  %v655_v29 = vsel %vm647_vm0, %v653_v19, %v654_v20 }
  0x2e   : > { %v2509_v30 = vpack.i.bf16 %v475_v28, %v473_v27  ;;  %v657_v31 = vsel %vm647_vm0, %v654_v20, %v656_v23  ;;  %v477_v32 = vrot.slane %v3404_v10, 1  ;;  %v479_v33 = vrot.slane %v368_v11, 1  ;;  %v2301_v11 = vld [vmem:[%s3383_s14 + $0x30] sm:$0xff]   ;;  %v324_v27 = vld [vmem:[%s3383_s14 + $0x3c] sm:$0xff]   ;;  %v326_v28 = vld [vmem:[%s3383_s14 + $0x44] sm:$0x1] }
  0x2f   : > { %2525 = vrot.lane.b32.xlu1 %v2524_v26, %s3246_s20  ;;  %v2529_v34 = vpack.i.bf16 %v657_v31, %v655_v29  ;;  %v371_v36 = vunpack.c.l.bf16 %v317_v25  ;;  %v481_v39 = vrot.slane %v3406_v12, 1  ;;  %v482_v41 = vrot.slane %v3424_v35, 1 }
  0x30   : > { %2510 = vrot.lane.b32.xlu0 %v2509_v30, %s3247_s23  ;;  %v478_v37 = vsel %vm470_vm1, %v476_v24, %v477_v32  ;;  %v480_v38 = vsel %vm470_vm1, %v477_v32, %v479_v33  ;;  %v2534_v43 = vpack.i.bf16 %v3424_v35, %v3406_v12  ;;  %v2519_v44 = vpack.i.bf16 %v3404_v10, %v3402_v9 }
  0x31   : > { %v2514_v40 = vpack.i.bf16 %v480_v38, %v478_v37  ;;  %v484_v42 = vrot.slane %v371_v36, 1  ;;  %v658_v45 = vrot.slane %v3406_v12, 2  ;;  %v483_v46 = vsel %vm470_vm1, %v481_v39, %v482_v41  ;;  %v3150_v38 = vld [vmem:[%s3378_s9 + $0x8] sm:$0xff]  }
  0x32   : > { %v659_v48 = vrot.slane %v3424_v35, 2  ;;  %v661_v49 = vrot.slane %v371_v36, 2  ;;  %v3444_v53 = vunpack.c.l.bf16 %v318_v50  ;;  %v3449_v56 = vunpack.c.h.bf16 %v318_v50  ;;  %v3149_v36 = vld [vmem:[%s3378_s9 + $0x10] ss:$0 sps:$4 sm:$0x33]  }
  0x33   : > { %2530 = vrot.lane.b32.xlu1 %v2529_v34, %s3246_s20  ;;  %v485_v47 = vsel %vm470_vm1, %v482_v41, %v484_v42  ;;  %v374_v57 = vunpack.c.l.bf16 %v320_v51  ;;  %v3473_v15 = vunpack.c.l.bf16 %v2301_v11  ;;  %v3475_v16 = vunpack.c.h.bf16 %v2301_v11  ;;  %v332_v11 = vld [vmem:[%s3383_s14 + $0x5c] sm:$0x1] }
  0x34   : > { %2515 = vrot.lane.b32.xlu0 %v2514_v40, %s3247_s23  ;;  %v2544_v52 = vpack.i.bf16 %v485_v47, %v483_v46  ;;  %v660_v54 = vsel %vm647_vm0, %v658_v45, %v659_v48  ;;  %v662_v55 = vsel %vm647_vm0, %v659_v48, %v661_v49  ;;  %v486_v59 = vrot.slane %v3444_v53, 1 }
  0x35   : > { %v2554_v58 = vpack.i.bf16 %v662_v55, %v660_v54  ;;  %v487_v60 = vrot.slane %v3449_v56, 1  ;;  %v489_v61 = vrot.slane %v374_v57, 1  ;;  %v2564_v62 = vpack.i.bf16 %v3449_v56, %v3444_v53  ;;  %v2302_v54 = vld [vmem:[%s3383_s14 + $0x48] sm:$0xff]   ;;  %v329_v55 = vld [vmem:[%s3383_s14 + $0x50] sm:$0x1] }
  0x36   : > { %v663_v2 = vrot.slane %v3444_v53, 2  ;;  %v664_v5 = vrot.slane %v3449_v56, 2  ;;  %v666_v6 = vrot.slane %v374_v57, 2  ;;  %v377_v17 = vunpack.c.l.bf16 %v323_v13 }
  0x37   : > { %2535 = vrot.lane.b32.xlu1 %v2534_v43, %s3248_s24  ;;  %v488_v63 = vsel %vm470_vm1, %v486_v59, %v487_v60  ;;  %v490_v0 = vsel %vm470_vm1, %v487_v60, %v489_v61  ;;  %v491_v18 = vrot.slane %v3473_v15, 1  ;;  %v492_v19 = vrot.slane %v3475_v16, 1 }
  0x38   : > { %2520 = vrot.lane.b32.xlu0 %v2519_v44, %s3248_s24  ;;  %v2574_v1 = vpack.i.bf16 %v490_v0, %v488_v63  ;;  %v665_v7 = vsel %vm647_vm0, %v663_v2, %v664_v5  ;;  %v667_v8 = vsel %vm647_vm0, %v664_v5, %v666_v6  ;;  %v494_v20 = vrot.slane %v377_v17, 1  ;;  %v3151_v44 = vld [vmem:[%s3378_s9] sm:$0xff]  }
  0x39   : > { %v2589_v14 = vpack.i.bf16 %v667_v8, %v665_v7  ;;  %v2614_v21 = vpack.i.bf16 %v3475_v16, %v3473_v15  ;;  %v668_v22 = vrot.slane %v3473_v15, 2  ;;  %v493_v23 = vsel %vm470_vm1, %v491_v18, %v492_v19  ;;  %v330_v8 = vld [vmem:[%s3383_s14 + $0x54] sm:$0xff]  }
  0x3a   : > { %v495_v24 = vsel %vm470_vm1, %v492_v19, %v494_v20  ;;  %v669_v25 = vrot.slane %v3475_v16, 2  ;;  %v671_v26 = vrot.slane %v377_v17, 2  ;;  %v3492_v30 = vunpack.c.l.bf16 %v324_v27 }
  0x3b   : > { %2545 = vrot.lane.b32.xlu1 %v2544_v52, %s3249_s28  ;;  %v2624_v29 = vpack.i.bf16 %v495_v24, %v493_v23  ;;  %v3497_v33 = vunpack.c.h.bf16 %v324_v27  ;;  %vm1777_vm2 = vcmask 1041408   ;;  %v3526_v59 = vunpack.c.h.bf16 %v2302_v54 }
  0x3c   : > { %2540 = vrot.lane.b32.xlu0 %v2514_v40, %s3249_s28  ;;  %v670_v31 = vsel %vm647_vm0, %v668_v22, %v669_v25  ;;  %v672_v32 = vsel %vm647_vm0, %v669_v25, %v671_v26  ;;  %v496_v39 = vrot.slane %v3492_v30, 1  ;;  %2423 = vmatprep.subr.msk.bf16.mxu0 %vm1777_vm2, %v3149_v36  ;;  %v1779_v42 = vsel %vm1777_vm2, %v3149_v36, 0 }
  0x3d   : > { %v2634_v37 = vpack.i.bf16 %v672_v32, %v670_v31  ;;  %v497_v40 = vrot.slane %v3497_v33, 1  ;;  %2424 = vmatprep.subr.msk.bf16.mxu1 %vm1777_vm2, %v3149_v36  ;;  %2345 = vmatpush3.bf16.msra.mxu0 %v1779_v42  ;;  %v673_v48 = vrot.slane %v3492_v30, 2  ;;  %v674_v49 = vrot.slane %v3497_v33, 2 }
  0x3e   : > { %2420 = vmatpush3.bf16.msra.mxu1 %v1779_v42  ;;  %2346 = vmatprep.subr.bf16.mxu0 %v3150_v38  ;;  %v383_v60 = vunpack.c.l.bf16 %v329_v55  ;;  %v679_v6 = vrot.slane %v3526_v59, 2  ;;  %v3548_v19 = vunpack.c.h.bf16 %v330_v8  ;;  %v386_v20 = vunpack.c.l.bf16 %v332_v11 }
  0x3f   : > { %2555 = vrot.lane.b32.xlu1 %v2554_v58, %s3250_s29  ;;  %v498_v45 = vsel %vm470_vm1, %v496_v39, %v497_v40  ;;  %2418 = vmatprep.subr.bf16.mxu1 %v3150_v38  ;;  %v675_v51 = vsel %vm647_vm0, %v673_v48, %v674_v49  ;;  %vm1426_vm3 = vcmask 31744   ;;  %vm1459_vm4 = vcmask 64512  }
  0x40   : > { %2550 = vrot.lane.b32.xlu0 %v2529_v34, %s3250_s29  ;;  %v380_v34 = vunpack.c.l.bf16 %v326_v28  ;;  %v504_v63 = vrot.slane %v383_v60, 1  ;;  %v681_v7 = vrot.slane %v383_v60, 2  ;;  %v507_v23 = vrot.slane %v3548_v19, 1 }
  0x41   : > { %2347 = vmatpush3.bf16.msra.mxu0 %v3150_v38  ;;  %v509_v24 = vrot.slane %v386_v20, 1  ;;  %v684_v31 = vrot.slane %v3548_v19, 2  ;;  %v686_v32 = vrot.slane %v386_v20, 2  ;;  %v341_v20 = vld [vmem:[%s3383_s14 + $0x80] sm:$0x1]  ;;  %vm1492_vm5 = vcmask 97280  }
  0x42   : > { %v499_v41 = vrot.slane %v380_v34, 1  ;;  %2421 = vmatpush3.bf16.msra.mxu1 %v3150_v38  ;;  %2348 = vmatprep.subr.bf16.mxu0 %v3151_v44  ;;  %v676_v50 = vrot.slane %v380_v34, 2  ;;  %v682_v18 = vsel %vm647_vm0, %v679_v6, %v681_v7  ;;  %v335_v38 = vld [vmem:[%s3383_s14 + $0x68] sm:$0x1]  ;;  %vm1525_vm6 = vcmask 130048  }
  0x43   : > { %2565 = vrot.lane.b32.xlu1 %v2564_v62, %s3251_s6  ;;  %2419 = vmatprep.subr.bf16.mxu1 %v3151_v44  ;;  %v510_v27 = vsel %vm470_vm1, %v507_v23, %v509_v24  ;;  %v687_v36 = vsel %vm647_vm0, %v684_v31, %v686_v32  ;;  %v389_v42 = vunpack.c.l.bf16 %v335_v38  ;;  %vm1558_vm7 = vcmask 162816  }
  0x44   : > { %2560 = vrot.lane.b32.xlu0 %v2534_v43, %s3251_s6  ;;  %v2644_v43 = vpack.i.bf16 %v3497_v33, %v3492_v30  ;;  %v500_v46 = vsel %vm470_vm1, %v497_v40, %v499_v41  ;;  %vm1591_vm8 = vcmask 195584   ;;  %vm1624_vm9 = vcmask 228352  }
  0x45   : > { %v2654_v47 = vpack.i.bf16 %v500_v46, %v498_v45  ;;  %2349 = vmatpush3.bf16.msra.mxu0 %v3151_v44  ;;  %v514_v45 = vrot.slane %v389_v42, 1  ;;  %vm1657_vm10 = vcmask 261120   ;;  %vm1728_vm11 = vcmask 293888  }
  0x46   : > { %2422 = vmatpush3.bf16.msra.mxu1 %v3151_v44  ;;  %vm3255_vm12 = vmmov 0  }
  0x47   : > { %2575 = vrot.lane.b32.xlu1 %v2574_v1, %s3252_s13 }
  0x48   : > { %2570 = vrot.lane.b32.xlu0 %v2544_v52, %s3252_s13 }
  0x4b   : > { %2585 = vrot.lane.b32.xlu1 %v2544_v52, %s3247_s23  ;;  %v677_v52 = vsel %vm647_vm0, %v674_v49, %v676_v50 }
  0x4c   : > { %2580 = vrot.lane.b32.xlu0 %v2554_v58, %s3253_s17  ;;  %v2669_v57 = vpack.i.bf16 %v677_v52, %v675_v51  ;;  %v691_v51 = vrot.slane %v389_v42, 2  ;;  %v336_v52 = vld [vmem:[%s3383_s14 + $0x6c] sm:$0xff]  }
  0x4f   : > { %2595 = vrot.lane.b32.xlu1 %v2574_v1, %s3247_s23 }
  0x50   : > { %2590 = vrot.lane.b32.xlu0 %v2589_v14, %s3253_s17 }
  0x53   : > { %2605 = vrot.lane.b32.xlu1 %v2589_v14, %s3246_s20 }
  0x54   : > { %2600 = vrot.lane.b32.xlu0 %v2554_v58, %s3246_s20  ;;  %v3524_v58 = vunpack.c.l.bf16 %v2302_v54  ;;  %v338_v54 = vld [vmem:[%s3383_s14 + $0x74] sm:$0x1] }
  0x56   : > { %v501_v61 = vrot.slane %v3524_v58, 1  ;;  %v2694_v0 = vpack.i.bf16 %v3526_v59, %v3524_v58 }
  0x57   : > { %2615 = vrot.lane.b32.xlu1 %v2614_v21, %s3248_s24 }
  0x58   : > { %2610 = vrot.lane.b32.xlu0 %v2564_v62, %s3248_s24  ;;  %v502_v62 = vrot.slane %v3526_v59, 1 }
  0x5a   : > { %v503_v2 = vsel %vm470_vm1, %v501_v61, %v502_v62  ;;  %v505_v5 = vsel %vm470_vm1, %v502_v62, %v504_v63  ;;  %v3596_v62 = vunpack.c.h.bf16 %v336_v52  ;;  %v392_v63 = vunpack.c.l.bf16 %v338_v54 }
  0x5b   : > { %2625 = vrot.lane.b32.xlu1 %v2624_v29, %s3249_s28  ;;  %v2704_v13 = vpack.i.bf16 %v505_v5, %v503_v2 }
  0x5c   : > { %2620 = vrot.lane.b32.xlu0 %v2574_v1, %s3249_s28  ;;  %v678_v1 = vrot.slane %v3524_v58, 2  ;;  %v517_v2 = vrot.slane %v3596_v62, 1  ;;  %v519_v5 = vrot.slane %v392_v63, 1  ;;  %v696_v24 = vrot.slane %v392_v63, 2 }
  0x5e   : > { %v680_v17 = vsel %vm647_vm0, %v678_v1, %v679_v6 }
  0x5f   : > { %2635 = vrot.lane.b32.xlu1 %v2634_v37, %s3250_s29 }
  0x60   : > { %2630 = vrot.lane.b32.xlu0 %v2589_v14, %s3250_s29  ;;  %v3543_v14 = vunpack.c.l.bf16 %v330_v8  ;;  %v520_v8 = vsel %vm470_vm1, %v517_v2, %v519_v5 }
  0x62   : > { %v506_v22 = vrot.slane %v3543_v14, 1  ;;  %v2724_v25 = vpack.i.bf16 %v3548_v19, %v3543_v14 }
  0x63   : > { %2645 = vrot.lane.b32.xlu1 %v2644_v43, %s3251_s6 }
  0x64   : > { %2640 = vrot.lane.b32.xlu0 %v2614_v21, %s3251_s6  ;;  %v2714_v21 = vpack.i.bf16 %v682_v18, %v680_v17  ;;  %v508_v26 = vsel %vm470_vm1, %v506_v22, %v507_v23  ;;  %v2304_v18 = vld [vmem:[%s3383_s14 + $0x78] sm:$0xff]   ;;  %v694_v23 = vrot.slane %v3596_v62, 2 }
  0x65   : > { %v2734_v28 = vpack.i.bf16 %v510_v27, %v508_v26  ;;  %v3632_v26 = vunpack.c.l.bf16 %v2304_v18  ;;  %v3634_v27 = vunpack.c.h.bf16 %v2304_v18 }
  0x66   : > { %v697_v32 = vsel %vm647_vm0, %v694_v23, %v696_v24 }
  0x67   : > { %2655 = vrot.lane.b32.xlu1 %v2654_v47, %s3252_s13  ;;  %v698_v42 = vrot.slane %v3632_v26, 2 }
  0x68   : > { %2650 = vrot.lane.b32.xlu0 %v2624_v29, %s3252_s13 }
  0x6b   : > { %2665 = vrot.lane.b32.xlu1 %v2624_v29, %s3247_s23  ;;  %v683_v29 = vrot.slane %v3543_v14, 2 }
  0x6c   : > { %2660 = vrot.lane.b32.xlu0 %v2634_v37, %s3253_s17 }
  0x6d   : > { %v685_v34 = vsel %vm647_vm0, %v683_v29, %v684_v31 }
  0x6e   : > { %v2749_v39 = vpack.i.bf16 %v687_v36, %v685_v34  ;;  %v521_v36 = vrot.slane %v3632_v26, 1 }
  0x6f   : > { %2675 = vrot.lane.b32.xlu1 %v2654_v47, %s3247_s23 }
  0x70   : > { %2670 = vrot.lane.b32.xlu0 %v2669_v57, %s3253_s17 }
  0x73   : > { %2685 = vrot.lane.b32.xlu1 %v2669_v57, %s3246_s20 }
  0x74   : > { %2680 = vrot.lane.b32.xlu0 %v2634_v37, %s3246_s20  ;;  %v2303_v37 = vld [vmem:[%s3383_s14 + $0x60] sm:$0xff]  }
  0x75   : > { %v3572_v40 = vunpack.c.l.bf16 %v2303_v37  ;;  %v3574_v41 = vunpack.c.h.bf16 %v2303_v37  ;;  %v522_v37 = vrot.slane %v3634_v27, 1 }
  0x77   : > { %2695 = vrot.lane.b32.xlu1 %v2694_v0, %s3248_s24  ;;  %v512_v44 = vrot.slane %v3574_v41, 1  ;;  %v2774_v46 = vpack.i.bf16 %v3574_v41, %v3572_v40  ;;  %v689_v50 = vrot.slane %v3574_v41, 2 }
  0x78   : > { %2690 = vrot.lane.b32.xlu0 %v2644_v43, %s3248_s24  ;;  %v511_v43 = vrot.slane %v3572_v40, 1 }
  0x79   : > { %v515_v49 = vsel %vm470_vm1, %v512_v44, %v514_v45  ;;  %v692_v61 = vsel %vm647_vm0, %v689_v50, %v691_v51  ;;  %v342_v45 = vld [vmem:[%s3383_s14 + $0x84] sm:$0xff]  }
  0x7a   : > { %v513_v48 = vsel %vm470_vm1, %v511_v43, %v512_v44  ;;  %v699_v43 = vrot.slane %v3634_v27, 2  ;;  %v3664_v51 = vunpack.c.l.bf16 %v342_v45 }
  0x7b   : > { %2705 = vrot.lane.b32.xlu1 %v2704_v13, %s3249_s28  ;;  %v2784_v55 = vpack.i.bf16 %v515_v49, %v513_v48  ;;  %v523_v49 = vsel %vm470_vm1, %v521_v36, %v522_v37 }
  0x7c   : > { %2700 = vrot.lane.b32.xlu0 %v2654_v47, %s3249_s28  ;;  %v688_v47 = vrot.slane %v3572_v40, 2  ;;  %v700_v54 = vsel %vm647_vm0, %v698_v42, %v699_v43 }
  0x7e   : > { %v690_v60 = vsel %vm647_vm0, %v688_v47, %v689_v50  ;;  %v3656_v47 = vld [vmem:[%s3383_s14 + $0x8c] sm:$0x1] }
  0x7f   : > { %2715 = vrot.lane.b32.xlu1 %v2714_v21, %s3250_s29 }
  0x80   : > { %2710 = vrot.lane.b32.xlu0 %v2669_v57, %s3250_s29  ;;  %v3591_v57 = vunpack.c.l.bf16 %v336_v52  ;;  %v3666_v52 = vunpack.c.h.bf16 %v342_v45 }
  0x82   : > { %v516_v1 = vrot.slane %v3591_v57, 1  ;;  %v3608_v6 = vpack.i.bf16 %v3596_v62, %v3591_v57  ;;  %v693_v22 = vrot.slane %v3591_v57, 2 }
  0x83   : > { %2725 = vrot.lane.b32.xlu1 %v2724_v25, %s3251_s6 }
  0x84   : > { %2720 = vrot.lane.b32.xlu0 %v2694_v0, %s3251_s6  ;;  %v3599_v0 = vpack.i.bf16 %v692_v61, %v690_v60  ;;  %v518_v7 = vsel %vm470_vm1, %v516_v1, %v517_v2  ;;  %v695_v31 = vsel %vm647_vm0, %v693_v22, %v694_v23  ;;  %v398_v60 = vunpack.c.l.bf16 %v3656_v47 }
  0x85   : > { %v3619_v17 = vpack.i.bf16 %v520_v8, %v518_v7  ;;  %v3679_v2 = vpack.i.bf16 %v3634_v27, %v3632_v26  ;;  %v526_v22 = vrot.slane %v3664_v51, 1 }
  0x87   : > { %2735 = vrot.lane.b32.xlu1 %v2734_v28, %s3252_s13 }
  0x88   : > { %2730 = vrot.lane.b32.xlu0 %v2704_v13, %s3252_s13 }
  0x8b   : > { %2745 = vrot.lane.b32.xlu1 %v2704_v13, %s3247_s23 }
  0x8c   : > { %2740 = vrot.lane.b32.xlu0 %v2714_v21, %s3253_s17 }
  0x8f   : > { %2755 = vrot.lane.b32.xlu1 %v2734_v28, %s3247_s23 }
  0x90   : > { %2750 = vrot.lane.b32.xlu0 %v2749_v39, %s3253_s17 }
  0x93   : > { %2765 = vrot.lane.b32.xlu1 %v2749_v39, %s3246_s20 }
  0x94   : > { %2760 = vrot.lane.b32.xlu0 %v2714_v21, %s3246_s20 }
  0x97   : > { %2775 = vrot.lane.b32.xlu1 %v2774_v46, %s3248_s24 }
  0x98   : > { %2770 = vrot.lane.b32.xlu0 %v2724_v25, %s3248_s24 }
  0x9b   : > { %2785 = vrot.lane.b32.xlu1 %v2784_v55, %s3249_s28 }
  0x9c   : > { %2780 = vrot.lane.b32.xlu0 %v2734_v28, %s3249_s28  ;;  %v395_v28 = vunpack.c.l.bf16 %v341_v20  ;;  %v3693_v20 = vpack.i.bf16 %v3666_v52, %v3664_v51 }
  0x9e   : > { %v524_v38 = vrot.slane %v395_v28, 1  ;;  %v701_v44 = vrot.slane %v395_v28, 2  ;;  %v529_v28 = vrot.slane %v398_v60, 1 }
  0x9f   : > { %2795 = vrot.lane.b32.xlu1 %v3599_v0, %s3250_s29 }
  0xa0   : > { %2790 = vrot.lane.b32.xlu0 %v2749_v39, %s3250_s29  ;;  %v3648_v39 = vpack.i.bf16 %v697_v32, %v695_v31  ;;  %v525_v50 = vsel %vm470_vm1, %v522_v37, %v524_v38 }
  0xa1   : > { %v3613_v11 = vpop.permute.xlu1 %2525  ;;  %v3685_v18 = vpack.i.bf16 %v525_v50, %v523_v49 }
  0xa2   : > { %v3615_v13 = vpop.permute.xlu0 %2510  ;;  %v2528_v23 = vunpack.i.h.bf16 %v3613_v11  ;;  %v2527_v24 = vunpack.i.l.bf16 %v3613_v11 }
  0xa3   : > { %2805 = vrot.lane.b32.xlu1 %v3608_v6, %s3251_s6  ;;  %v2513_v61 = vunpack.i.h.bf16 %v3615_v13  ;;  %v2512_v63 = vunpack.i.l.bf16 %v3615_v13 }
  0xa4   : > { %2800 = vrot.lane.b32.xlu0 %v2774_v46, %s3251_s6 }
  0xa5   : > { %v3624_v21 = vpop.permute.xlu1 %2530  ;;  %v1428_v31 = vsel %vm1426_vm3, %v3397_v4, %v2513_v61  ;;  %v1427_v32 = vsel %vm1426_vm3, %v3395_v3, %v2512_v63 }
  0xa6   : > { %v3628_v25 = vpop.permute.xlu0 %2515  ;;  %v2533_v36 = vunpack.i.h.bf16 %v3624_v21  ;;  %v2532_v37 = vunpack.i.l.bf16 %v3624_v21  ;;  %v703_v21 = vrot.slane %v3664_v51, 2  ;;  %v1461_v45 = vsel %vm1459_vm4, %v1428_v31, %v2528_v23 }
  0xa7   : > { %2815 = vrot.lane.b32.xlu1 %v3619_v17, %s3252_s13  ;;  %v2518_v5 = vunpack.i.h.bf16 %v3628_v25  ;;  %v2517_v7 = vunpack.i.l.bf16 %v3628_v25  ;;  %v527_v25 = vrot.slane %v3666_v52, 1 }
  0xa8   : > { %2810 = vrot.lane.b32.xlu0 %v2784_v55, %s3252_s13 }
  0xa9   : > { %v3637_v29 = vpop.permute.xlu1 %2535  ;;  %v1429_v38 = vsel %vm1426_vm3, %v3402_v9, %v2517_v7  ;;  %v528_v9 = vsel %vm470_vm1, %v526_v22, %v527_v25 }
  0xaa   : > { %v3641_v34 = vpop.permute.xlu0 %2520  ;;  %v2538_v42 = vunpack.i.h.bf16 %v3637_v29  ;;  %v2537_v4 = vunpack.i.l.bf16 %v3637_v29  ;;  %v530_v29 = vsel %vm470_vm1, %v527_v25, %v529_v28  ;;  %v1462_v49 = vsel %vm1459_vm4, %v1429_v38, %v2532_v37 }
  0xab   : > { %2825 = vrot.lane.b32.xlu1 %v2784_v55, %s3247_s23  ;;  %v702_v55 = vsel %vm647_vm0, %v699_v43, %v701_v44  ;;  %v2523_v3 = vunpack.i.h.bf16 %v3641_v34  ;;  %v2522_v44 = vunpack.i.l.bf16 %v3641_v34 }
  0xac   : > { %2820 = vrot.lane.b32.xlu0 %v3599_v0, %s3253_s17  ;;  %v3689_v13 = vpack.i.bf16 %v702_v55, %v700_v54  ;;  %v1495_v61 = vsel %vm1492_vm5, %v1462_v49, %v2537_v4 }
  0xad   : > { %v3653_v46 = vpop.permute.xlu1 %2545  ;;  %v1494_v23 = vsel %vm1492_vm5, %v1461_v45, %v2523_v3 }
  0xae   : > { %v3658_v48 = vpop.permute.xlu0 %2540  ;;  %v2547_v28 = vunpack.i.l.bf16 %v3653_v46 }
  0xaf   : > { %2835 = vrot.lane.b32.xlu1 %v3619_v17, %s3247_s23  ;;  %v2543_v50 = vunpack.i.h.bf16 %v3658_v48  ;;  %v2542_v54 = vunpack.i.l.bf16 %v3658_v48  ;;  %v2548_v48 = vunpack.i.h.bf16 %v3653_v46 }
  0xb0   : > { %2830 = vrot.lane.b32.xlu0 %v3648_v39, %s3253_s17 }
  0xb1   : > { %v3675_v1 = vpop.permute.xlu1 %2555 }
  0xb2   : > { %v3683_v8 = vpop.permute.xlu0 %2550  ;;  %v2558_v37 = vunpack.i.h.bf16 %v3675_v1 }
  0xb3   : > { %2845 = vrot.lane.b32.xlu1 %v3648_v39, %s3246_s20 }
  0xb4   : > { %2840 = vrot.lane.b32.xlu0 %v3599_v0, %s3246_s20  ;;  %v1430_v0 = vsel %vm1426_vm3, %v3404_v10, %v2518_v5  ;;  %v1460_v10 = vsel %vm1459_vm4, %v1427_v32, %v2527_v24  ;;  %v2552_v5 = vunpack.i.l.bf16 %v3683_v8 }
  0xb5   : > { %v3709_v11 = vpop.permute.xlu1 %2565  ;;  %v1463_v34 = vsel %vm1459_vm4, %v1430_v0, %v2533_v36  ;;  %v1493_v22 = vsel %vm1492_vm5, %v1460_v10, %v2522_v44  ;;  %v1527_v36 = vsel %vm1525_vm6, %v1494_v23, %v2543_v50  ;;  %v2557_v0 = vunpack.i.l.bf16 %v3675_v1 }
  0xb6   : > { %v2561_v43 = vpop.permute.xlu0 %2560  ;;  %v1496_v63 = vsel %vm1492_vm5, %v1463_v34, %v2538_v42  ;;  %v2568_v46 = vunpack.i.h.bf16 %v3709_v11  ;;  %v1528_v50 = vsel %vm1525_vm6, %v1495_v61, %v2547_v28 }
  0xb7   : > { %2855 = vrot.lane.b32.xlu1 %v3679_v2, %s3248_s24  ;;  %v2563_v24 = vunpack.i.h.bf16 %v2561_v43  ;;  %v2562_v25 = vunpack.i.l.bf16 %v2561_v43  ;;  %v2567_v43 = vunpack.i.l.bf16 %v3709_v11 }
  0xb8   : > { %2850 = vrot.lane.b32.xlu0 %v3608_v6, %s3248_s24  ;;  %v2553_v6 = vunpack.i.h.bf16 %v3683_v8  ;;  %v1526_v8 = vsel %vm1525_vm6, %v1493_v22, %v2542_v54  ;;  %v1529_v54 = vsel %vm1525_vm6, %v1496_v63, %v2548_v48 }
  0xb9   : > { %v2576_v55 = vpop.permute.xlu1 %2575  ;;  %v1559_v42 = vsel %vm1558_vm7, %v1526_v8, %v2552_v5  ;;  %v1562_v22 = vsel %vm1558_vm7, %v1529_v54, %v2558_v37 }
  0xba   : > { %v2571_v7 = vpop.permute.xlu0 %2570  ;;  %v1560_v4 = vsel %vm1558_vm7, %v1527_v36, %v2553_v6  ;;  %v1592_v10 = vsel %vm1591_vm8, %v1559_v42, %v2562_v25  ;;  %v2578_v45 = vunpack.i.h.bf16 %v2576_v55  ;;  %v2577_v49 = vunpack.i.l.bf16 %v2576_v55  ;;  %v2305_v25 = vld [vmem:[%s3383_s14 + $0x90] sm:$0xff]  }
  0xbb   : > { %2865 = vrot.lane.b32.xlu1 %v3685_v18, %s3249_s28  ;;  %v2573_v31 = vunpack.i.h.bf16 %v2571_v7  ;;  %v2572_v32 = vunpack.i.l.bf16 %v2571_v7  ;;  %v1593_v1 = vsel %vm1591_vm8, %v1560_v4, %v2563_v24  ;;  %v1561_v55 = vsel %vm1558_vm7, %v1528_v50, %v2557_v0  ;;  %v3817_v50 = vld [vmem:[%s3383_s14 + $0xa4] sm:$0x1] }
  0xbc   : > { %2860 = vrot.lane.b32.xlu0 %v3619_v17, %s3249_s28  ;;  %v3770_v24 = vpack.i.bf16 %v530_v29, %v528_v9  ;;  %v1594_v61 = vsel %vm1591_vm8, %v1561_v55, %v2567_v43  ;;  %v1595_v28 = vsel %vm1591_vm8, %v1562_v22, %v2568_v46  ;;  %v704_v9 = vrot.slane %v3666_v52, 2 }
  0xbd   : > { %v3748_v38 = vpop.permute.xlu1 %2585  ;;  %v1625_v34 = vsel %vm1624_vm9, %v1592_v10, %v2572_v32  ;;  %v1626_v11 = vsel %vm1624_vm9, %v1593_v1, %v2573_v31  ;;  %v347_v31 = vld [vmem:[%s3383_s14 + $0x98] sm:$0x1]  ;;  %v1627_v32 = vsel %vm1624_vm9, %v1594_v61, %v2577_v49  ;;  %v1628_v8 = vsel %vm1624_vm9, %v1595_v28, %v2578_v45 }
  0xbe   : > { %v2581_v3 = vpop.permute.xlu0 %2580  ;;  %v706_v29 = vrot.slane %v398_v60, 2  ;;  %v3790_v42 = vunpack.c.l.bf16 %v2305_v25  ;;  %v3792_v4 = vunpack.c.h.bf16 %v2305_v25  ;;  %v401_v43 = vunpack.c.l.bf16 %v347_v31 }
  0xbf   : > { %v2583_v17 = vunpack.i.h.bf16 %v2581_v3  ;;  %v2582_v44 = vunpack.i.l.bf16 %v2581_v3  ;;  %2875 = vrot.lane.b32.xlu1 %v3689_v13, %s3250_s29  ;;  %v705_v60 = vsel %vm647_vm0, %v703_v21, %v704_v9 }
  0xc0   : > { %2870 = vrot.lane.b32.xlu0 %v3648_v39, %s3250_s29  ;;  %v707_v3 = vsel %vm647_vm0, %v704_v9, %v706_v29  ;;  %v534_v1 = vrot.slane %v401_v43, 1  ;;  %v708_v45 = vrot.slane %v3790_v42, 2  ;;  %v709_v49 = vrot.slane %v3792_v4, 2 }
  0xc1   : > { %v3764_v6 = vpop.permute.xlu1 %2595  ;;  %v1658_v5 = vsel %vm1657_vm10, %v1625_v34, %v2582_v44  ;;  %v1659_v7 = vsel %vm1657_vm10, %v1626_v11, %v2583_v17  ;;  %v531_v17 = vrot.slane %v3790_v42, 1  ;;  %v532_v44 = vrot.slane %v3792_v4, 1  ;;  %v348_v11 = vld [vmem:[%s3383_s14 + $0x9c] sm:$0xff]  }
  0xc2   : > { %v2591_v39 = vpop.permute.xlu0 %2590  ;;  %v1690_v23 = vpack.c.bf16 %v1659_v7, %v1658_v5  ;;  %v711_v34 = vrot.slane %v401_v43, 2  ;;  %v3821_v21 = vpack.i.bf16 %v707_v3, %v705_v60  ;;  %v3829_v55 = vunpack.c.l.bf16 %v348_v11 }
  0xc3   : > { %v2593_v63 = vunpack.i.h.bf16 %v2591_v39  ;;  %v2592_v48 = vunpack.i.l.bf16 %v2591_v39  ;;  %2885 = vrot.lane.b32.xlu1 %v3693_v20, %s3251_s6  ;;  %v533_v5 = vsel %vm470_vm1, %v531_v17, %v532_v44  ;;  %v3831_v22 = vunpack.c.h.bf16 %v348_v11 }
  0xc4   : > { %2880 = vrot.lane.b32.xlu0 %v3679_v2, %s3251_s6  ;;  %2350 = vmatprep.mubr.msk.bf16.mxu0 %vm1728_vm11, %v1690_v23  ;;  %v404_v39 = vunpack.c.l.bf16 %v3817_v50  ;;  %v710_v23 = vsel %vm647_vm0, %v708_v45, %v709_v49  ;;  %v712_v25 = vsel %vm647_vm0, %v709_v49, %v711_v34  ;;  %v3844_v28 = vpack.i.bf16 %v3792_v4, %v3790_v42  ;;  %v3963_v50 = vld [vmem:[%s3383_s14 + $0xbc] sm:$0x1] }
  0xc5   : > { %v1660_v36 = vsel %vm1657_vm10, %v1627_v32, %v2592_v48  ;;  %v1661_v37 = vsel %vm1657_vm10, %v1628_v8, %v2593_v63  ;;  %v3788_v0 = vpop.permute.xlu1 %2605  ;;  %v3848_v31 = vpack.i.bf16 %v712_v25, %v710_v23  ;;  %v536_v32 = vrot.slane %v3829_v55, 1 }
  0xc6   : > { %v3794_v46 = vpop.permute.xlu0 %2600  ;;  %v1691_v2 = vpack.c.bf16 %v1661_v37, %v1660_v36  ;;  %v537_v8 = vrot.slane %v3831_v22, 1  ;;  %v539_v9 = vrot.slane %v404_v39, 1  ;;  %v2598_v29 = vunpack.i.h.bf16 %v3764_v6 }
  0xc7   : > { %2895 = vrot.lane.b32.xlu1 %v3770_v24, %s3252_s13  ;;  %v2597_v36 = vunpack.i.l.bf16 %v3764_v6  ;;  %v3860_v37 = vpack.i.bf16 %v3831_v22, %v3829_v55  ;;  %v2587_v43 = vunpack.i.l.bf16 %v3748_v38  ;;  %v2608_v60 = vunpack.i.h.bf16 %v3788_v0 }
  0xc8   : > { %2890 = vrot.lane.b32.xlu0 %v3685_v18, %s3252_s13  ;;  %2351 = vmatmul.mubr.msk.bf16.vlgmr.msra.gmra.mxu0 %vm1728_vm11, %v1691_v2  ;;  %v2588_v2 = vunpack.i.h.bf16 %v3748_v38  ;;  %v2607_v3 = vunpack.i.l.bf16 %v3788_v0  ;;  %v2603_v6 = vunpack.i.h.bf16 %v3794_v46  ;;  %v2602_v17 = vunpack.i.l.bf16 %v3794_v46 }
  0xc9   : > { %v3801_v47 = vpop.permute.xlu1 %2615  ;;  %v538_v34 = vsel %vm470_vm1, %v536_v32, %v537_v8  ;;  %v540_v0 = vsel %vm470_vm1, %v537_v8, %v539_v9  ;;  %v1433_v11 = vsel %vm1426_vm3, %v3444_v53, %v2597_v36 }
  0xca   : > { %v3809_v10 = vpop.permute.xlu0 %2610  ;;  %v2618_v45 = vunpack.i.h.bf16 %v3801_v47  ;;  %v2617_v49 = vunpack.i.l.bf16 %v3801_v47  ;;  %v1432_v47 = vsel %vm1426_vm3, %v3424_v35, %v2588_v2  ;;  %v1466_v23 = vsel %vm1459_vm4, %v1433_v11, %v2607_v3 }
  0xcb   : > { %2905 = vrot.lane.b32.xlu1 %v3685_v18, %s3247_s23  ;;  %v535_v18 = vsel %vm470_vm1, %v532_v44, %v534_v1  ;;  %v713_v1 = vrot.slane %v3829_v55, 2  ;;  %v2613_v46 = vunpack.i.h.bf16 %v3809_v10  ;;  %v1465_v53 = vsel %vm1459_vm4, %v1432_v47, %v2603_v6 }
  0xcc   : > { %2900 = vrot.lane.b32.xlu0 %v3689_v13, %s3253_s17  ;;  %v3846_v63 = vpack.i.bf16 %v535_v18, %v533_v5  ;;  %v2612_v5 = vunpack.i.l.bf16 %v3809_v10  ;;  %v1431_v18 = vsel %vm1426_vm3, %v3406_v12, %v2587_v43  ;;  %v1499_v35 = vsel %vm1492_vm5, %v1466_v23, %v2617_v49 }
  0xcd   : > { %v3823_v54 = vpop.permute.xlu1 %2625  ;;  %v1464_v10 = vsel %vm1459_vm4, %v1431_v18, %v2602_v17 }
  0xce   : > { %v3826_v7 = vpop.permute.xlu0 %2620  ;;  %v1497_v2 = vsel %vm1492_vm5, %v1464_v10, %v2612_v5  ;;  %v2628_v3 = vunpack.i.h.bf16 %v3823_v54 }
  0xcf   : > { %2915 = vrot.lane.b32.xlu1 %v3770_v24, %s3247_s23  ;;  %v2623_v25 = vunpack.i.h.bf16 %v3826_v7  ;;  %v2622_v32 = vunpack.i.l.bf16 %v3826_v7  ;;  %v2627_v7 = vunpack.i.l.bf16 %v3823_v54 }
  0xd0   : > { %2910 = vrot.lane.b32.xlu0 %v3821_v21, %s3253_s17 }
  0xd1   : > { %v3840_v61 = vpop.permute.xlu1 %2635 }
  0xd2   : > { %v2631_v48 = vpop.permute.xlu0 %2630  ;;  %v2638_v49 = vunpack.i.h.bf16 %v3840_v61 }
  0xd3   : > { %2925 = vrot.lane.b32.xlu1 %v3821_v21, %s3246_s20  ;;  %v2633_v9 = vunpack.i.h.bf16 %v2631_v48 }
  0xd4   : > { %2920 = vrot.lane.b32.xlu0 %v3689_v13, %s3246_s20  ;;  %v1434_v13 = vsel %vm1426_vm3, %v3449_v56, %v2598_v29  ;;  %v2632_v29 = vunpack.i.l.bf16 %v2631_v48  ;;  %v1530_v48 = vsel %vm1525_vm6, %v1497_v2, %v2622_v32 }
  0xd5   : > { %v3870_v44 = vpop.permute.xlu1 %2645  ;;  %v1467_v56 = vsel %vm1459_vm4, %v1434_v13, %v2608_v60 }
  0xd6   : > { %v2641_v38 = vpop.permute.xlu0 %2640  ;;  %v1500_v12 = vsel %vm1492_vm5, %v1467_v56, %v2618_v45  ;;  %v1563_v11 = vsel %vm1558_vm7, %v1530_v48, %v2632_v29  ;;  %v2648_v54 = vunpack.i.h.bf16 %v3870_v44  ;;  %v2647_v5 = vunpack.i.l.bf16 %v3870_v44 }
  0xd7   : > { %2935 = vrot.lane.b32.xlu1 %v3844_v28, %s3248_s24  ;;  %v2643_v43 = vunpack.i.h.bf16 %v2641_v38  ;;  %v2642_v60 = vunpack.i.l.bf16 %v2641_v38  ;;  %v2637_v38 = vunpack.i.l.bf16 %v3840_v61  ;;  %v1532_v44 = vsel %vm1525_vm6, %v1499_v35, %v2627_v7 }
  0xd8   : > { %2930 = vrot.lane.b32.xlu0 %v3693_v20, %s3248_s24  ;;  %v1498_v20 = vsel %vm1492_vm5, %v1465_v53, %v2613_v46  ;;  %v1533_v32 = vsel %vm1525_vm6, %v1500_v12, %v2628_v3 }
  0xd9   : > { %v2656_v8 = vpop.permute.xlu1 %2655  ;;  %v1531_v45 = vsel %vm1525_vm6, %v1498_v20, %v2623_v25  ;;  %v1566_v2 = vsel %vm1558_vm7, %v1533_v32, %v2638_v49 }
  0xda   : > { %v2651_v36 = vpop.permute.xlu0 %2650  ;;  %v1564_v46 = vsel %vm1558_vm7, %v1531_v45, %v2633_v9  ;;  %v2658_v61 = vunpack.i.h.bf16 %v2656_v8  ;;  %v2657_v53 = vunpack.i.l.bf16 %v2656_v8  ;;  %v1565_v8 = vsel %vm1558_vm7, %v1532_v44, %v2637_v38 }
  0xdb   : > { %2945 = vrot.lane.b32.xlu1 %v3846_v63, %s3249_s28  ;;  %v2653_v6 = vunpack.i.h.bf16 %v2651_v36  ;;  %v2652_v17 = vunpack.i.l.bf16 %v2651_v36  ;;  %v1597_v18 = vsel %vm1591_vm8, %v1564_v46, %v2643_v43  ;;  %v1598_v35 = vsel %vm1591_vm8, %v1565_v8, %v2647_v5 }
  0xdc   : > { %2940 = vrot.lane.b32.xlu0 %v3770_v24, %s3249_s28  ;;  %v1596_v24 = vsel %vm1591_vm8, %v1563_v11, %v2642_v60  ;;  %v3933_v60 = vpack.i.bf16 %v540_v0, %v538_v34  ;;  %v1599_v7 = vsel %vm1591_vm8, %v1566_v2, %v2648_v54  ;;  %v714_v34 = vrot.slane %v3831_v22, 2 }
  0xdd   : > { %v3911_v13 = vpop.permute.xlu1 %2665  ;;  %v1629_v10 = vsel %vm1624_vm9, %v1596_v24, %v2652_v17  ;;  %v1630_v25 = vsel %vm1624_vm9, %v1597_v18, %v2653_v6  ;;  %v353_v6 = vld [vmem:[%s3383_s14 + $0xb0] sm:$0x1]  ;;  %v1631_v17 = vsel %vm1624_vm9, %v1598_v35, %v2657_v53  ;;  %v1632_v48 = vsel %vm1624_vm9, %v1599_v7, %v2658_v61 }
  0xde   : > { %v2661_v47 = vpop.permute.xlu0 %2660  ;;  %v716_v0 = vrot.slane %v404_v39, 2  ;;  %v715_v24 = vsel %vm647_vm0, %v713_v1, %v714_v34  ;;  %v410_v44 = vunpack.c.l.bf16 %v3963_v50 }
  0xdf   : > { %v2663_v23 = vunpack.i.h.bf16 %v2661_v47  ;;  %v2662_v56 = vunpack.i.l.bf16 %v2661_v47  ;;  %2955 = vrot.lane.b32.xlu1 %v3848_v31, %s3250_s29  ;;  %v354_v47 = vld [vmem:[%s3383_s14 + $0xb4] sm:$0xff]  }
  0xe0   : > { %2950 = vrot.lane.b32.xlu0 %v3821_v21, %s3250_s29  ;;  %v2306_v21 = vld [vmem:[%s3383_s14 + $0xa8] sm:$0xff]   ;;  %v717_v18 = vsel %vm647_vm0, %v714_v34, %v716_v0  ;;  %v549_v35 = vrot.slane %v410_v44, 1 }
  0xe1   : > { %v1662_v9 = vsel %vm1657_vm10, %v1629_v10, %v2662_v56  ;;  %v1663_v29 = vsel %vm1657_vm10, %v1630_v25, %v2663_v23  ;;  %v3929_v36 = vpop.permute.xlu1 %2675  ;;  %v3953_v11 = vunpack.c.l.bf16 %v2306_v21  ;;  %v3955_v46 = vunpack.c.h.bf16 %v2306_v21 }
  0xe2   : > { %v1692_v20 = vpack.c.bf16 %v1663_v29, %v1662_v9  ;;  %v2671_v43 = vpop.permute.xlu0 %2670  ;;  %v3978_v10 = vunpack.c.l.bf16 %v354_v47  ;;  %v3980_v25 = vunpack.c.h.bf16 %v354_v47  ;;  %v3989_v29 = vpack.i.bf16 %v717_v18, %v715_v24 }
  0xe3   : > { %v2673_v12 = vunpack.i.h.bf16 %v2671_v43  ;;  %v2672_v3 = vunpack.i.l.bf16 %v2671_v43  ;;  %2965 = vrot.lane.b32.xlu1 %v3860_v37, %s3251_s6  ;;  %v541_v23 = vrot.slane %v3953_v11, 1  ;;  %v542_v56 = vrot.slane %v3955_v46, 1 }
  0xe4   : > { %2960 = vrot.lane.b32.xlu0 %v3844_v28, %s3251_s6  ;;  %2354 = vmatprep.mubr.msk.bf16.mxu0 %vm1728_vm11, %v1692_v20  ;;  %v407_v28 = vunpack.c.l.bf16 %v353_v6  ;;  %v718_v1 = vrot.slane %v3953_v11, 2  ;;  %v719_v32 = vrot.slane %v3955_v46, 2  ;;  %v547_v21 = vrot.slane %v3980_v25, 1 }
  0xe5   : > { %v1665_v45 = vsel %vm1657_vm10, %v1632_v48, %v2673_v12  ;;  %v1664_v49 = vsel %vm1657_vm10, %v1631_v17, %v2672_v3  ;;  %v3951_v38 = vpop.permute.xlu1 %2685  ;;  %v543_v2 = vsel %vm470_vm1, %v541_v23, %v542_v56  ;;  %v4011_v6 = vpack.i.bf16 %v3955_v46, %v3953_v11 }
  0xe6   : > { %v1693_v54 = vpack.c.bf16 %v1665_v45, %v1664_v49  ;;  %v3957_v5 = vpop.permute.xlu0 %2680  ;;  %v544_v53 = vrot.slane %v407_v28, 1  ;;  %v721_v9 = vrot.slane %v407_v28, 2  ;;  %v720_v7 = vsel %vm647_vm0, %v718_v1, %v719_v32 }
  0xe7   : > { %2975 = vrot.lane.b32.xlu1 %v3933_v60, %s3252_s13  ;;  %v550_v45 = vsel %vm470_vm1, %v547_v21, %v549_v35  ;;  %v2678_v49 = vunpack.i.h.bf16 %v3929_v36  ;;  %v4025_v28 = vpack.i.bf16 %v3980_v25, %v3978_v10  ;;  %v2668_v47 = vunpack.i.h.bf16 %v3911_v13 }
  0xe8   : > { %2970 = vrot.lane.b32.xlu0 %v3846_v63, %s3252_s13  ;;  %2355 = vmatmul.mubr.msk.bf16.gmra.mxu0 %vm1728_vm11, %v1693_v54  ;;  %v545_v43 = vsel %vm470_vm1, %v542_v56, %v544_v53  ;;  %v722_v12 = vsel %vm647_vm0, %v719_v32, %v721_v9  ;;  %v2677_v54 = vunpack.i.l.bf16 %v3929_v36  ;;  %v2667_v24 = vunpack.i.l.bf16 %v3911_v13 }
  0xe9   : > { %v3968_v39 = vpop.permute.xlu1 %2695  ;;  %v4013_v17 = vpack.i.bf16 %v545_v43, %v543_v2  ;;  %v4015_v34 = vpack.i.bf16 %v722_v12, %v720_v7  ;;  %v2688_v18 = vunpack.i.h.bf16 %v3951_v38  ;;  %v2687_v23 = vunpack.i.l.bf16 %v3951_v38 }
  0xea   : > { %v3976_v61 = vpop.permute.xlu0 %2690  ;;  %v2683_v36 = vunpack.i.h.bf16 %v3957_v5  ;;  %v2682_v56 = vunpack.i.l.bf16 %v3957_v5  ;;  %v2698_v32 = vunpack.i.h.bf16 %v3968_v39  ;;  %v2697_v9 = vunpack.i.l.bf16 %v3968_v39 }
  0xeb   : > { %2985 = vrot.lane.b32.xlu1 %v3846_v63, %s3247_s23  ;;  %v546_v63 = vrot.slane %v3978_v10, 1  ;;  %v723_v2 = vrot.slane %v3978_v10, 2  ;;  %v1438_v38 = vsel %vm1426_vm3, %v3497_v33, %v2678_v49  ;;  %v2693_v43 = vunpack.i.h.bf16 %v3976_v61 }
  0xec   : > { %2980 = vrot.lane.b32.xlu0 %v3848_v31, %s3253_s17  ;;  %v2692_v5 = vunpack.i.l.bf16 %v3976_v61  ;;  %v1435_v39 = vsel %vm1426_vm3, %v3473_v15, %v2667_v24  ;;  %v1471_v33 = vsel %vm1459_vm4, %v1438_v38, %v2688_v18 }
  0xed   : > { %v3991_v8 = vpop.permute.xlu1 %2705  ;;  %v548_v0 = vsel %vm470_vm1, %v546_v63, %v547_v21  ;;  %v1436_v63 = vsel %vm1426_vm3, %v3475_v16, %v2668_v47  ;;  %v1468_v61 = vsel %vm1459_vm4, %v1435_v39, %v2682_v56  ;;  %v1504_v15 = vsel %vm1492_vm5, %v1471_v33, %v2698_v32 }
  0xee   : > { %v3994_v20 = vpop.permute.xlu0 %2700  ;;  %v4037_v1 = vpack.i.bf16 %v550_v45, %v548_v0  ;;  %v2708_v18 = vunpack.i.h.bf16 %v3991_v8 }
  0xef   : > { %2995 = vrot.lane.b32.xlu1 %v3933_v60, %s3247_s23  ;;  %v2703_v35 = vunpack.i.h.bf16 %v3994_v20  ;;  %v2702_v7 = vunpack.i.l.bf16 %v3994_v20  ;;  %v2707_v20 = vunpack.i.l.bf16 %v3991_v8 }
  0xf0   : > { %2990 = vrot.lane.b32.xlu0 %v3989_v29, %s3253_s17 }
  0xf1   : > { %v4007_v3 = vpop.permute.xlu1 %2715 }
  0xf2   : > { %v2711_v48 = vpop.permute.xlu0 %2710  ;;  %v2718_v32 = vunpack.i.h.bf16 %v4007_v3 }
  0xf3   : > { %3005 = vrot.lane.b32.xlu1 %v3989_v29, %s3246_s20  ;;  %v2713_v0 = vunpack.i.h.bf16 %v2711_v48  ;;  %v2712_v45 = vunpack.i.l.bf16 %v2711_v48 }
  0xf4   : > { %3000 = vrot.lane.b32.xlu0 %v3848_v31, %s3246_s20  ;;  %v1437_v31 = vsel %vm1426_vm3, %v3492_v30, %v2677_v54  ;;  %v1469_v30 = vsel %vm1459_vm4, %v1436_v63, %v2683_v36  ;;  %v1501_v54 = vsel %vm1492_vm5, %v1468_v61, %v2692_v5 }
  0xf5   : > { %v4035_v53 = vpop.permute.xlu1 %2725  ;;  %v1470_v21 = vsel %vm1459_vm4, %v1437_v31, %v2687_v23  ;;  %v1534_v48 = vsel %vm1525_vm6, %v1501_v54, %v2702_v7 }
  0xf6   : > { %v2721_v13 = vpop.permute.xlu0 %2720  ;;  %v1503_v16 = vsel %vm1492_vm5, %v1470_v21, %v2697_v9  ;;  %v2717_v9 = vunpack.i.l.bf16 %v4007_v3  ;;  %v1567_v38 = vsel %vm1558_vm7, %v1534_v48, %v2712_v45  ;;  %v2728_v8 = vunpack.i.h.bf16 %v4035_v53 }
  0xf7   : > { %3015 = vrot.lane.b32.xlu1 %v4011_v6, %s3248_s24  ;;  %v2723_v47 = vunpack.i.h.bf16 %v2721_v13  ;;  %v2722_v24 = vunpack.i.l.bf16 %v2721_v13  ;;  %v726_v48 = vrot.slane %v410_v44, 2 }
  0xf8   : > { %3010 = vrot.lane.b32.xlu0 %v3860_v37, %s3248_s24  ;;  %v1502_v37 = vsel %vm1492_vm5, %v1469_v30, %v2693_v43  ;;  %v2727_v43 = vunpack.i.l.bf16 %v4035_v53  ;;  %v1536_v53 = vsel %vm1525_vm6, %v1503_v16, %v2707_v20 }
  0xf9   : > { %v2736_v12 = vpop.permute.xlu1 %2735  ;;  %v1535_v56 = vsel %vm1525_vm6, %v1502_v37, %v2703_v35  ;;  %v1537_v35 = vsel %vm1525_vm6, %v1504_v15, %v2708_v18 }
  0xfa   : > { %v2731_v49 = vpop.permute.xlu0 %2730  ;;  %v1568_v31 = vsel %vm1558_vm7, %v1535_v56, %v2713_v0  ;;  %v2738_v3 = vunpack.i.h.bf16 %v2736_v12  ;;  %v2737_v33 = vunpack.i.l.bf16 %v2736_v12  ;;  %v1569_v12 = vsel %vm1558_vm7, %v1536_v53, %v2717_v9 }
  0xfb   : > { %3025 = vrot.lane.b32.xlu1 %v4013_v17, %s3249_s28  ;;  %v2733_v23 = vunpack.i.h.bf16 %v2731_v49  ;;  %v2732_v36 = vunpack.i.l.bf16 %v2731_v49  ;;  %v1601_v63 = vsel %vm1591_vm8, %v1568_v31, %v2723_v47  ;;  %v2307_v49 = vld [vmem:[%s3383_s14 + $0xc0] sm:$0xff]   ;;  %v1570_v54 = vsel %vm1558_vm7, %v1537_v35, %v2718_v32 }
  0xfc   : > { %3020 = vrot.lane.b32.xlu0 %v3933_v60, %s3249_s28  ;;  %v1600_v60 = vsel %vm1591_vm8, %v1567_v38, %v2722_v24  ;;  %v724_v24 = vrot.slane %v3980_v25, 2  ;;  %v1602_v16 = vsel %vm1591_vm8, %v1569_v12, %v2727_v43  ;;  %v1603_v15 = vsel %vm1591_vm8, %v1570_v54, %v2728_v8 }
  0xfd   : > { %v4076_v13 = vpop.permute.xlu1 %2745  ;;  %v1633_v30 = vsel %vm1624_vm9, %v1600_v60, %v2732_v36  ;;  %v1634_v61 = vsel %vm1624_vm9, %v1601_v63, %v2733_v23  ;;  %v1635_v23 = vsel %vm1624_vm9, %v1602_v16, %v2737_v33  ;;  %v1636_v36 = vsel %vm1624_vm9, %v1603_v15, %v2738_v3  ;;  %v362_v60 = vld [vmem:[%s3383_s14 + $0xd4] sm:$0x1] }
  0xfe   : > { %v2741_v5 = vpop.permute.xlu0 %2740  ;;  %v2298_v56 = vunpack.c.l.bf16 %v2307_v49  ;;  %v2299_v31 = vunpack.c.h.bf16 %v2307_v49  ;;  %v725_v50 = vsel %vm647_vm0, %v723_v2, %v724_v24  ;;  %v727_v44 = vsel %vm647_vm0, %v724_v24, %v726_v48 }
  0xff   : > { %v2743_v39 = vunpack.i.h.bf16 %v2741_v5  ;;  %v2742_v21 = vunpack.i.l.bf16 %v2741_v5  ;;  %3035 = vrot.lane.b32.xlu1 %v4015_v34, %s3250_s29  ;;  %v4141_v2 = vpack.i.bf16 %v727_v44, %v725_v50 }
 0x100   : > { %3030 = vrot.lane.b32.xlu0 %v3989_v29, %s3250_s29  ;;  %v359_v29 = vld [vmem:[%s3383_s14 + $0xc8] sm:$0x1]  ;;  %v923_v63 = vrot.slane %v2298_v56, 1  ;;  %v1024_v33 = vrot.slane %v2298_v56, 2  ;;  %v4157_v15 = vpack.i.bf16 %v2299_v31, %v2298_v56 }
 0x101   : > { %v1666_v7 = vsel %vm1657_vm10, %v1633_v30, %v2742_v21  ;;  %v1667_v0 = vsel %vm1657_vm10, %v1634_v61, %v2743_v39  ;;  %v4094_v45 = vpop.permute.xlu1 %2755  ;;  %v413_v8 = vunpack.c.l.bf16 %v359_v29  ;;  %v924_v21 = vrot.slane %v2299_v31, 1 }
 0x102   : > { %v1694_v37 = vpack.c.bf16 %v1667_v0, %v1666_v7  ;;  %v2751_v47 = vpop.permute.xlu0 %2750  ;;  %v1025_v30 = vrot.slane %v2299_v31, 2  ;;  %v416_v0 = vunpack.c.l.bf16 %v362_v60  ;;  %v2757_v56 = vunpack.i.l.bf16 %v4094_v45 }
 0x103   : > { %v2753_v18 = vunpack.i.h.bf16 %v2751_v47  ;;  %v2752_v20 = vunpack.i.l.bf16 %v2751_v47  ;;  %3045 = vrot.lane.b32.xlu1 %v4025_v28, %s3251_s6  ;;  %v926_v3 = vrot.slane %v413_v8, 1  ;;  %v1027_v53 = vrot.slane %v413_v8, 2 }
 0x104   : > { %3040 = vrot.lane.b32.xlu0 %v4011_v6, %s3251_s6  ;;  %2358 = vmatprep.mubr.msk.bf16.mxu0 %vm1728_vm11, %v1694_v37  ;;  %v360_v6 = vld [vmem:[%s3383_s14 + $0xcc] sm:$0xff]   ;;  %v925_v12 = vsel %vm470_vm1, %v923_v63, %v924_v21  ;;  %v1026_v37 = vsel %vm647_vm0, %v1024_v33, %v1025_v30  ;;  %v1227_v16 = vrot.slane %v416_v0, 1  ;;  %v2758_v8 = vunpack.i.h.bf16 %v4094_v45 }
 0x105   : > { %v1669_v32 = vsel %vm1657_vm10, %v1636_v36, %v2753_v18  ;;  %v1668_v9 = vsel %vm1657_vm10, %v1635_v23, %v2752_v20  ;;  %v4114_v38 = vpop.permute.xlu1 %2765  ;;  %v4133_v35 = vunpack.c.l.bf16 %v360_v6  ;;  %v4135_v7 = vunpack.c.h.bf16 %v360_v6 }
 0x106   : > { %v1695_v43 = vpack.c.bf16 %v1669_v32, %v1668_v9  ;;  %v4116_v5 = vpop.permute.xlu0 %2760  ;;  %v927_v54 = vsel %vm470_vm1, %v924_v21, %v926_v3  ;;  %v1028_v24 = vsel %vm647_vm0, %v1025_v30, %v1027_v53  ;;  %v2748_v31 = vunpack.i.h.bf16 %v4076_v13 }
 0x107   : > { %3055 = vrot.lane.b32.xlu1 %v4037_v1, %s3252_s13  ;;  %v1224_v29 = vrot.slane %v4133_v35, 1  ;;  %v4161_v20 = vpack.i.bf16 %v927_v54, %v925_v12  ;;  %v4163_v23 = vpack.i.bf16 %v1028_v24, %v1026_v37  ;;  %v3124_v48 = vpack.i.bf16 %v4135_v7, %v4133_v35 }
 0x108   : > { %3050 = vrot.lane.b32.xlu0 %v4013_v17, %s3252_s13  ;;  %2359 = vmatmul.mubr.msk.bf16.gmra.mxu0 %vm1728_vm11, %v1695_v43  ;;  %v2747_v43 = vunpack.i.l.bf16 %v4076_v13  ;;  %v2768_v6 = vunpack.i.h.bf16 %v4114_v38  ;;  %v2767_v60 = vunpack.i.l.bf16 %v4114_v38  ;;  %v2763_v50 = vunpack.i.h.bf16 %v4116_v5 }
 0x109   : > { %v4129_v39 = vpop.permute.xlu1 %2775  ;;  %v2762_v44 = vunpack.i.l.bf16 %v4116_v5  ;;  %v1325_v21 = vrot.slane %v4133_v35, 2  ;;  %v1326_v38 = vrot.slane %v4135_v7, 2  ;;  %v4193_v30 = vrot.slane %v416_v0, 2 }
 0x10a   : > { %v4131_v61 = vpop.permute.xlu0 %2770  ;;  %v2778_v13 = vunpack.i.h.bf16 %v4129_v39  ;;  %v2777_v3 = vunpack.i.l.bf16 %v4129_v39  ;;  %v1441_v5 = vsel %vm1426_vm3, %v3543_v14, %v2757_v56  ;;  %v1440_v39 = vsel %vm1426_vm3, %v3526_v59, %v2748_v31 }
 0x10b   : > { %3065 = vrot.lane.b32.xlu1 %v4013_v17, %s3247_s23  ;;  %v1225_v17 = vrot.slane %v4135_v7, 1  ;;  %v2773_v53 = vunpack.i.h.bf16 %v4131_v61  ;;  %v2772_v12 = vunpack.i.l.bf16 %v4131_v61  ;;  %v1439_v0 = vsel %vm1426_vm3, %v3524_v58, %v2747_v43 }
 0x10c   : > { %3060 = vrot.lane.b32.xlu0 %v4015_v34, %s3253_s17  ;;  %v1474_v54 = vsel %vm1459_vm4, %v1441_v5, %v2767_v60  ;;  %v1473_v14 = vsel %vm1459_vm4, %v1440_v39, %v2763_v50  ;;  %v1472_v61 = vsel %vm1459_vm4, %v1439_v0, %v2762_v44 }
 0x10d   : > { %v4143_v49 = vpop.permute.xlu1 %2785  ;;  %v4168_v32 = vsel %vm470_vm1, %v1224_v29, %v1225_v17  ;;  %v4171_v9 = vsel %vm470_vm1, %v1225_v17, %v1227_v16  ;;  %v1507_v59 = vsel %vm1492_vm5, %v1474_v54, %v2777_v3  ;;  %v1505_v56 = vsel %vm1492_vm5, %v1472_v61, %v2772_v12 }
 0x10e   : > { %v4148_v47 = vpop.permute.xlu0 %2780  ;;  %v3134_v45 = vpack.i.bf16 %v4171_v9, %v4168_v32 }
 0x10f   : > { %3075 = vrot.lane.b32.xlu1 %v4037_v1, %s3247_s23  ;;  %v2783_v37 = vunpack.i.h.bf16 %v4148_v47  ;;  %v2782_v24 = vunpack.i.l.bf16 %v4148_v47  ;;  %v2787_v47 = vunpack.i.l.bf16 %v4143_v49 }
 0x110   : > { %3070 = vrot.lane.b32.xlu0 %v4141_v2, %s3253_s17 }
 0x111   : > { %v4159_v18 = vpop.permute.xlu1 %2795 }
 0x112   : > { %v2791_v36 = vpop.permute.xlu0 %2790  ;;  %v2797_v3 = vunpack.i.l.bf16 %v4159_v18 }
 0x113   : > { %3085 = vrot.lane.b32.xlu1 %v4141_v2, %s3246_s20  ;;  %v2793_v17 = vunpack.i.h.bf16 %v2791_v36  ;;  %v2792_v16 = vunpack.i.l.bf16 %v2791_v36  ;;  %v1538_v36 = vsel %vm1525_vm6, %v1505_v56, %v2782_v24 }
 0x114   : > { %3080 = vrot.lane.b32.xlu0 %v4015_v34, %s3246_s20  ;;  %v1442_v34 = vsel %vm1426_vm3, %v3548_v19, %v2758_v8 }
 0x115   : > { %v4185_v63 = vpop.permute.xlu1 %2805  ;;  %v1475_v19 = vsel %vm1459_vm4, %v1442_v34, %v2768_v6  ;;  %v2788_v6 = vunpack.i.h.bf16 %v4143_v49  ;;  %v1571_v34 = vsel %vm1558_vm7, %v1538_v36, %v2792_v16 }
 0x116   : > { %v2801_v33 = vpop.permute.xlu0 %2800  ;;  %v1508_v58 = vsel %vm1492_vm5, %v1475_v19, %v2778_v13  ;;  %v2798_v13 = vunpack.i.h.bf16 %v4159_v18  ;;  %v2808_v49 = vunpack.i.h.bf16 %v4185_v63 }
 0x117   : > { %3095 = vrot.lane.b32.xlu1 %v4157_v15, %s3248_s24  ;;  %v2803_v31 = vunpack.i.h.bf16 %v2801_v33  ;;  %v2802_v43 = vunpack.i.l.bf16 %v2801_v33 }
 0x118   : > { %3090 = vrot.lane.b32.xlu0 %v4025_v28, %s3248_s24  ;;  %v1506_v28 = vsel %vm1492_vm5, %v1473_v14, %v2773_v53  ;;  %v2807_v53 = vunpack.i.l.bf16 %v4185_v63  ;;  %v1540_v63 = vsel %vm1525_vm6, %v1507_v59, %v2787_v47 }
 0x119   : > { %v2816_v29 = vpop.permute.xlu1 %2815  ;;  %v1539_v44 = vsel %vm1525_vm6, %v1506_v28, %v2783_v37  ;;  %v1541_v37 = vsel %vm1525_vm6, %v1508_v58, %v2788_v6 }
 0x11a   : > { %v2811_v8 = vpop.permute.xlu0 %2810  ;;  %v1572_v5 = vsel %vm1558_vm7, %v1539_v44, %v2793_v17  ;;  %v2818_v18 = vunpack.i.h.bf16 %v2816_v29  ;;  %v2817_v19 = vunpack.i.l.bf16 %v2816_v29  ;;  %v1574_v29 = vsel %vm1558_vm7, %v1541_v37, %v2798_v13 }
 0x11b   : > { %3105 = vrot.lane.b32.xlu1 %v4161_v20, %s3249_s28  ;;  %v2813_v60 = vunpack.i.h.bf16 %v2811_v8  ;;  %v2812_v50 = vunpack.i.l.bf16 %v2811_v8  ;;  %v1605_v39 = vsel %vm1591_vm8, %v1572_v5, %v2803_v31  ;;  %v1573_v8 = vsel %vm1558_vm7, %v1540_v63, %v2797_v3 }
 0x11c   : > { %3100 = vrot.lane.b32.xlu0 %v4037_v1, %s3249_s28  ;;  %v1604_v1 = vsel %vm1591_vm8, %v1571_v34, %v2802_v43  ;;  %v1606_v59 = vsel %vm1591_vm8, %v1573_v8, %v2807_v53  ;;  %v1607_v58 = vsel %vm1591_vm8, %v1574_v29, %v2808_v49 }
 0x11d   : > { %v4229_v33 = vpop.permute.xlu1 %2825  ;;  %v1637_v14 = vsel %vm1624_vm9, %v1604_v1, %v2812_v50  ;;  %v1638_v61 = vsel %vm1624_vm9, %v1605_v39, %v2813_v60  ;;  %v1639_v6 = vsel %vm1624_vm9, %v1606_v59, %v2817_v19  ;;  %v1640_v47 = vsel %vm1624_vm9, %v1607_v58, %v2818_v18 }
 0x11e   : > { %v2821_v12 = vpop.permute.xlu0 %2820  ;;  %v2828_v3 = vunpack.i.h.bf16 %v4229_v33 }
 0x11f   : > { %v2823_v0 = vunpack.i.h.bf16 %v2821_v12  ;;  %v2822_v54 = vunpack.i.l.bf16 %v2821_v12  ;;  %3115 = vrot.lane.b32.xlu1 %v4163_v23, %s3250_s29 }
 0x120   : > { %3110 = vrot.lane.b32.xlu0 %v4141_v2, %s3250_s29  ;;  %v1327_v2 = vsel %vm647_vm0, %v1325_v21, %v1326_v38  ;;  %v1329_v21 = vsel %vm647_vm0, %v1326_v38, %v4193_v30 }
 0x121   : > { %v1670_v24 = vsel %vm1657_vm10, %v1637_v14, %v2822_v54  ;;  %v1671_v17 = vsel %vm1657_vm10, %v1638_v61, %v2823_v0  ;;  %v2836_v16 = vpop.permute.xlu1 %2835  ;;  %v1444_v14 = vsel %vm1426_vm3, %v3574_v41, %v2828_v3 }
 0x122   : > { %v1696_v56 = vpack.c.bf16 %v1671_v17, %v1670_v24  ;;  %v2831_v28 = vpop.permute.xlu0 %2830  ;;  %v2838_v9 = vunpack.i.h.bf16 %v2836_v16 }
 0x123   : > { %v2833_v31 = vunpack.i.h.bf16 %v2831_v28  ;;  %v2832_v43 = vunpack.i.l.bf16 %v2831_v28  ;;  %3125 = vrot.lane.b32.xlu1 %v3124_v48, %s3251_s6 }
 0x124   : > { %3120 = vrot.lane.b32.xlu0 %v4157_v15, %s3251_s6  ;;  %2362 = vmatprep.mubr.msk.bf16.mxu0 %vm1728_vm11, %v1696_v56  ;;  %v3144_v15 = vpack.i.bf16 %v1329_v21, %v1327_v2  ;;  %v1446_v0 = vsel %vm1426_vm3, %v3596_v62, %v2838_v9 }
 0x125   : > { %v1673_v60 = vsel %vm1657_vm10, %v1640_v47, %v2833_v31  ;;  %v1672_v50 = vsel %vm1657_vm10, %v1639_v6, %v2832_v43  ;;  %v2846_v35 = vpop.permute.xlu1 %2845 }
 0x126   : > { %v1697_v48 = vpack.c.bf16 %v1673_v60, %v1672_v50  ;;  %v2841_v36 = vpop.permute.xlu0 %2840  ;;  %v2848_v34 = vunpack.i.h.bf16 %v2846_v35  ;;  %v2847_v5 = vunpack.i.l.bf16 %v2846_v35 }
 0x127   : > { %3135 = vrot.lane.b32.xlu1 %v3134_v45, %s3252_s13  ;;  %v2837_v45 = vunpack.i.l.bf16 %v2836_v16  ;;  %v2843_v49 = vunpack.i.h.bf16 %v2841_v36  ;;  %v2842_v53 = vunpack.i.l.bf16 %v2841_v36 }
 0x128   : > { %3130 = vrot.lane.b32.xlu0 %v4161_v20, %s3252_s13  ;;  %2363 = vmatmul.mubr.msk.bf16.gmra.mxu0 %vm1728_vm11, %v1697_v48  ;;  %v2827_v20 = vunpack.i.l.bf16 %v4229_v33  ;;  %v1479_v63 = vsel %vm1459_vm4, %v1446_v0, %v2848_v34 }
 0x129   : > { %v2856_v7 = vpop.permute.xlu1 %2855  ;;  %v1445_v54 = vsel %vm1426_vm3, %v3591_v57, %v2837_v45  ;;  %v1477_v37 = vsel %vm1459_vm4, %v1444_v14, %v2843_v49 }
 0x12a   : > { %v2851_v38 = vpop.permute.xlu0 %2850  ;;  %v2858_v1 = vunpack.i.h.bf16 %v2856_v7  ;;  %v2857_v39 = vunpack.i.l.bf16 %v2856_v7  ;;  %v1443_v33 = vsel %vm1426_vm3, %v3572_v40, %v2827_v20  ;;  %v1478_v61 = vsel %vm1459_vm4, %v1445_v54, %v2847_v5 }
 0x12b   : > { %3145 = vrot.lane.b32.xlu1 %v3144_v15, %s3253_s17  ;;  %v2853_v18 = vunpack.i.h.bf16 %v2851_v38  ;;  %v2852_v19 = vunpack.i.l.bf16 %v2851_v38  ;;  %v1476_v24 = vsel %vm1459_vm4, %v1443_v33, %v2842_v53 }
 0x12c   : > { %3140 = vrot.lane.b32.xlu0 %v4163_v23, %s3253_s17  ;;  %v1511_v57 = vsel %vm1492_vm5, %v1478_v61, %v2857_v39  ;;  %v1512_v8 = vsel %vm1492_vm5, %v1479_v63, %v2858_v1 }
 0x12d   : > { %v4281_v30 = vpop.permute.xlu1 %2865  ;;  %v1509_v40 = vsel %vm1492_vm5, %v1476_v24, %v2852_v19  ;;  %v1510_v28 = vsel %vm1492_vm5, %v1477_v37, %v2853_v18 }
 0x12e   : > { %v2861_v44 = vpop.permute.xlu0 %2860  ;;  %v2868_v58 = vunpack.i.h.bf16 %v4281_v30  ;;  %v2867_v31 = vunpack.i.l.bf16 %v4281_v30 }
 0x12f   : > { %v2863_v62 = vunpack.i.h.bf16 %v2861_v44  ;;  %v2862_v17 = vunpack.i.l.bf16 %v2861_v44 }
 0x130   : > { %v1544_v34 = vsel %vm1525_vm6, %v1511_v57, %v2867_v31  ;;  %v1545_v5 = vsel %vm1525_vm6, %v1512_v8, %v2868_v58 }
 0x131   : > { %v4283_v13 = vpop.permute.xlu1 %2875  ;;  %v1542_v47 = vsel %vm1525_vm6, %v1509_v40, %v2862_v17  ;;  %v1543_v21 = vsel %vm1525_vm6, %v1510_v28, %v2863_v62 }
 0x132   : > { %v2871_v32 = vpop.permute.xlu0 %2870  ;;  %v2878_v60 = vunpack.i.h.bf16 %v4283_v13  ;;  %v2877_v50 = vunpack.i.l.bf16 %v4283_v13 }
 0x133   : > { %v2873_v29 = vunpack.i.h.bf16 %v2871_v32  ;;  %v2872_v41 = vunpack.i.l.bf16 %v2871_v32 }
 0x134   : > { %v1577_v1 = vsel %vm1558_vm7, %v1544_v34, %v2877_v50  ;;  %v1578_v39 = vsel %vm1558_vm7, %v1545_v5, %v2878_v60 }
 0x135   : > { %v2886_v12 = vpop.permute.xlu1 %2885  ;;  %v1575_v48 = vsel %vm1558_vm7, %v1542_v47, %v2872_v41  ;;  %v1576_v36 = vsel %vm1558_vm7, %v1543_v21, %v2873_v29 }
 0x136   : > { %v2881_v23 = vpop.permute.xlu0 %2880  ;;  %v2888_v15 = vunpack.i.h.bf16 %v2886_v12  ;;  %v2887_v7 = vunpack.i.l.bf16 %v2886_v12 }
 0x137   : > { %v2883_v2 = vunpack.i.h.bf16 %v2881_v23  ;;  %v2882_v59 = vunpack.i.l.bf16 %v2881_v23 }
 0x138   : > { %v1610_v54 = vsel %vm1591_vm8, %v1577_v1, %v2887_v7  ;;  %v1611_v18 = vsel %vm1591_vm8, %v1578_v39, %v2888_v15 }
 0x139   : > { %v2896_v16 = vpop.permute.xlu1 %2895  ;;  %v1608_v30 = vsel %vm1591_vm8, %v1575_v48, %v2882_v59  ;;  %v1609_v44 = vsel %vm1591_vm8, %v1576_v36, %v2883_v2 }
 0x13a   : > { %v2891_v56 = vpop.permute.xlu0 %2890  ;;  %v2898_v45 = vunpack.i.h.bf16 %v2896_v16  ;;  %v2897_v3 = vunpack.i.l.bf16 %v2896_v16 }
 0x13b   : > { %v2893_v43 = vunpack.i.h.bf16 %v2891_v56  ;;  %v2892_v6 = vunpack.i.l.bf16 %v2891_v56 }
 0x13c   : > { %v1643_v33 = vsel %vm1624_vm9, %v1610_v54, %v2897_v3  ;;  %v1644_v61 = vsel %vm1624_vm9, %v1611_v18, %v2898_v45 }
 0x13d   : > { %v2906_v35 = vpop.permute.xlu1 %2905  ;;  %v1641_v20 = vsel %vm1624_vm9, %v1608_v30, %v2892_v6  ;;  %v1642_v13 = vsel %vm1624_vm9, %v1609_v44, %v2893_v43 }
 0x13e   : > { %v2901_v38 = vpop.permute.xlu0 %2900  ;;  %v2908_v2 = vunpack.i.h.bf16 %v2906_v35  ;;  %v2907_v59 = vunpack.i.l.bf16 %v2906_v35 }
 0x13f   : > { %v2903_v32 = vunpack.i.h.bf16 %v2901_v38  ;;  %v2902_v9 = vunpack.i.l.bf16 %v2901_v38 }
 0x140   : > { %v1448_v38 = vsel %vm1426_vm3, %v3634_v27, %v2908_v2  ;;  %v1447_v35 = vsel %vm1426_vm3, %v3632_v26, %v2907_v59 }
 0x141   : > { %v2916_v49 = vpop.permute.xlu1 %2915  ;;  %v1674_v53 = vsel %vm1657_vm10, %v1641_v20, %v2902_v9  ;;  %v1675_v12 = vsel %vm1657_vm10, %v1642_v13, %v2903_v32 }
 0x142   : > { %v2911_v23 = vpop.permute.xlu0 %2910  ;;  %v1698_v0 = vpack.c.bf16 %v1675_v12, %v1674_v53  ;;  %v2918_v40 = vunpack.i.h.bf16 %v2916_v49  ;;  %v2917_v28 = vunpack.i.l.bf16 %v2916_v49 }
 0x143   : > { %v2913_v19 = vunpack.i.h.bf16 %v2911_v23  ;;  %v2912_v14 = vunpack.i.l.bf16 %v2911_v23 }
 0x144   : > { %2366 = vmatprep.mubr.msk.bf16.mxu1 %vm1728_vm11, %v1698_v0  ;;  %v1450_v48 = vsel %vm1426_vm3, %v3666_v52, %v2918_v40  ;;  %v1449_v36 = vsel %vm1426_vm3, %v3664_v51, %v2917_v28 }
 0x145   : > { %v1677_v63 = vsel %vm1657_vm10, %v1644_v61, %v2913_v19  ;;  %v1676_v37 = vsel %vm1657_vm10, %v1643_v33, %v2912_v14  ;;  %v2926_v24 = vpop.permute.xlu1 %2925 }
 0x146   : > { %v1699_v62 = vpack.c.bf16 %v1677_v63, %v1676_v37  ;;  %v2921_v17 = vpop.permute.xlu0 %2920  ;;  %v2928_v58 = vunpack.i.h.bf16 %v2926_v24  ;;  %v2927_v31 = vunpack.i.l.bf16 %v2926_v24 }
 0x147   : > { %v2923_v43 = vunpack.i.h.bf16 %v2921_v17  ;;  %v2922_v6 = vunpack.i.l.bf16 %v2921_v17 }
 0x148   : > { %2367 = vmatmul.mubr.msk.bf16.vlgmr.msra.gmra.mxu1 %vm1728_vm11, %v1699_v62  ;;  %v1482_v30 = vsel %vm1459_vm4, %v1449_v36, %v2927_v31  ;;  %v1483_v44 = vsel %vm1459_vm4, %v1450_v48, %v2928_v58 }
 0x149   : > { %v2936_v16 = vpop.permute.xlu1 %2935  ;;  %v1481_v32 = vsel %vm1459_vm4, %v1448_v38, %v2923_v43  ;;  %v1480_v9 = vsel %vm1459_vm4, %v1447_v35, %v2922_v6 }
 0x14a   : > { %v2931_v57 = vpop.permute.xlu0 %2930  ;;  %v2938_v21 = vunpack.i.h.bf16 %v2936_v16  ;;  %v2937_v60 = vunpack.i.l.bf16 %v2936_v16 }
 0x14b   : > { %v2933_v15 = vunpack.i.h.bf16 %v2931_v57  ;;  %v2932_v7 = vunpack.i.l.bf16 %v2931_v57 }
 0x14c   : > { %v1515_v51 = vsel %vm1492_vm5, %v1482_v30, %v2937_v60  ;;  %v1516_v20 = vsel %vm1492_vm5, %v1483_v44, %v2938_v21 }
 0x14d   : > { %v4329_v8 = vpop.permute.xlu1 %2945  ;;  %v1513_v26 = vsel %vm1492_vm5, %v1480_v9, %v2932_v7  ;;  %v1514_v5 = vsel %vm1492_vm5, %v1481_v32, %v2933_v15 }
 0x14e   : > { %v2941_v29 = vpop.permute.xlu0 %2940  ;;  %v2948_v12 = vunpack.i.h.bf16 %v4329_v8  ;;  %v2947_v1 = vunpack.i.l.bf16 %v4329_v8 }
 0x14f   : > { %v2943_v52 = vunpack.i.h.bf16 %v2941_v29  ;;  %v2942_v45 = vunpack.i.l.bf16 %v2941_v29 }
 0x150   : > { %v1548_v40 = vsel %vm1525_vm6, %v1515_v51, %v2947_v1  ;;  %v1549_v28 = vsel %vm1525_vm6, %v1516_v20, %v2948_v12 }
 0x151   : > { %v4331_v41 = vpop.permute.xlu1 %2955  ;;  %v1546_v0 = vsel %vm1525_vm6, %v1513_v26, %v2942_v45  ;;  %v1547_v54 = vsel %vm1525_vm6, %v1514_v5, %v2943_v52 }
 0x152   : > { %v2951_v56 = vpop.permute.xlu0 %2950  ;;  %v2958_v18 = vunpack.i.h.bf16 %v4331_v41  ;;  %v2957_v19 = vunpack.i.l.bf16 %v4331_v41 }
 0x153   : > { %v2953_v13 = vunpack.i.h.bf16 %v2951_v56  ;;  %v2952_v27 = vunpack.i.l.bf16 %v2951_v56 }
 0x154   : > { %v1581_v31 = vsel %vm1558_vm7, %v1548_v40, %v2957_v19  ;;  %v1582_v43 = vsel %vm1558_vm7, %v1549_v28, %v2958_v18 }
 0x155   : > { %v2966_v47 = vpop.permute.xlu1 %2965  ;;  %v1579_v33 = vsel %vm1558_vm7, %v1546_v0, %v2952_v27  ;;  %v1580_v61 = vsel %vm1558_vm7, %v1547_v54, %v2953_v13 }
 0x156   : > { %v2961_v50 = vpop.permute.xlu0 %2960  ;;  %v2968_v63 = vunpack.i.h.bf16 %v2966_v47  ;;  %v2967_v37 = vunpack.i.l.bf16 %v2966_v47 }
 0x157   : > { %v2963_v49 = vunpack.i.h.bf16 %v2961_v50  ;;  %v2962_v53 = vunpack.i.l.bf16 %v2961_v50 }
 0x158   : > { %v1614_v21 = vsel %vm1591_vm8, %v1581_v31, %v2967_v37  ;;  %v1615_v60 = vsel %vm1591_vm8, %v1582_v43, %v2968_v63 }
 0x159   : > { %v2976_v3 = vpop.permute.xlu1 %2975  ;;  %v1612_v62 = vsel %vm1591_vm8, %v1579_v33, %v2962_v53  ;;  %v1613_v17 = vsel %vm1591_vm8, %v1580_v61, %v2963_v49 }
 0x15a   : > { %v2971_v34 = vpop.permute.xlu0 %2970  ;;  %v2978_v8 = vunpack.i.h.bf16 %v2976_v3  ;;  %v2977_v29 = vunpack.i.l.bf16 %v2976_v3 }
 0x15b   : > { %v2973_v39 = vunpack.i.h.bf16 %v2971_v34  ;;  %v2972_v23 = vunpack.i.l.bf16 %v2971_v34 }
 0x15c   : > { %v1647_v36 = vsel %vm1624_vm9, %v1614_v21, %v2977_v29  ;;  %v1648_v15 = vsel %vm1624_vm9, %v1615_v60, %v2978_v8 }
 0x15d   : > { %v2986_v14 = vpop.permute.xlu1 %2985  ;;  %v1645_v56 = vsel %vm1624_vm9, %v1612_v62, %v2972_v23  ;;  %v1646_v41 = vsel %vm1624_vm9, %v1613_v17, %v2973_v39 }
 0x15e   : > { %v2981_v24 = vpop.permute.xlu0 %2980  ;;  %v2988_v27 = vunpack.i.h.bf16 %v2986_v14  ;;  %v2987_v34 = vunpack.i.l.bf16 %v2986_v14 }
 0x15f   : > { %v2983_v16 = vunpack.i.h.bf16 %v2981_v24  ;;  %v2982_v57 = vunpack.i.l.bf16 %v2981_v24 }
 0x160   : > { %v1452_v33 = vsel %vm1426_vm3, %v3792_v4, %v2988_v27  ;;  %v1451_v14 = vsel %vm1426_vm3, %v3790_v42, %v2987_v34 }
 0x161   : > { %v1678_v2 = vsel %vm1657_vm10, %v1645_v56, %v2982_v57  ;;  %v1679_v59 = vsel %vm1657_vm10, %v1646_v41, %v2983_v16  ;;  %v2996_v58 = vpop.permute.xlu1 %2995 }
 0x162   : > { %v1700_v6 = vpack.c.bf16 %v1679_v59, %v1678_v2  ;;  %v2991_v47 = vpop.permute.xlu0 %2990  ;;  %v2998_v20 = vunpack.i.h.bf16 %v2996_v58  ;;  %v2997_v13 = vunpack.i.l.bf16 %v2996_v58 }
 0x163   : > { %v2993_v50 = vunpack.i.h.bf16 %v2991_v47  ;;  %v2992_v48 = vunpack.i.l.bf16 %v2991_v47 }
 0x164   : > { %2370 = vmatprep.mubr.msk.bf16.mxu1 %vm1728_vm11, %v1700_v6  ;;  %v1454_v0 = vsel %vm1426_vm3, %v3831_v22, %v2998_v20  ;;  %v1453_v54 = vsel %vm1426_vm3, %v3829_v55, %v2997_v13 }
 0x165   : > { %v1681_v7 = vsel %vm1657_vm10, %v1648_v15, %v2993_v50  ;;  %v1680_v38 = vsel %vm1657_vm10, %v1647_v36, %v2992_v48  ;;  %v3006_v35 = vpop.permute.xlu1 %3005 }
 0x166   : > { %v1701_v30 = vpack.c.bf16 %v1681_v7, %v1680_v38  ;;  %v3001_v44 = vpop.permute.xlu0 %3000  ;;  %v3008_v26 = vunpack.i.h.bf16 %v3006_v35  ;;  %v3007_v5 = vunpack.i.l.bf16 %v3006_v35 }
 0x167   : > { %v3003_v49 = vunpack.i.h.bf16 %v3001_v44  ;;  %v3002_v53 = vunpack.i.l.bf16 %v3001_v44 }
 0x168   : > { %2371 = vmatmul.mubr.msk.bf16.gmra.mxu1 %vm1728_vm11, %v1701_v30  ;;  %v1486_v61 = vsel %vm1459_vm4, %v1453_v54, %v3007_v5  ;;  %v1487_v63 = vsel %vm1459_vm4, %v1454_v0, %v3008_v26 }
 0x169   : > { %v3016_v32 = vpop.permute.xlu1 %3015  ;;  %v1485_v37 = vsel %vm1459_vm4, %v1452_v33, %v3003_v49  ;;  %v1484_v24 = vsel %vm1459_vm4, %v1451_v14, %v3002_v53 }
 0x16a   : > { %v3011_v9 = vpop.permute.xlu0 %3010  ;;  %v3018_v1 = vunpack.i.h.bf16 %v3016_v32  ;;  %v3017_v39 = vunpack.i.l.bf16 %v3016_v32 }
 0x16b   : > { %v3013_v18 = vunpack.i.h.bf16 %v3011_v9  ;;  %v3012_v19 = vunpack.i.l.bf16 %v3011_v9 }
 0x16c   : > { %v1519_v55 = vsel %vm1492_vm5, %v1486_v61, %v3017_v39  ;;  %v1520_v16 = vsel %vm1492_vm5, %v1487_v63, %v3018_v1 }
 0x16d   : > { %v4375_v52 = vpop.permute.xlu1 %3025  ;;  %v1517_v42 = vsel %vm1492_vm5, %v1484_v24, %v3012_v19  ;;  %v1518_v29 = vsel %vm1492_vm5, %v1485_v37, %v3013_v18 }
 0x16e   : > { %v3021_v45 = vpop.permute.xlu0 %3020  ;;  %v3028_v40 = vunpack.i.h.bf16 %v4375_v52  ;;  %v3027_v28 = vunpack.i.l.bf16 %v4375_v52 }
 0x16f   : > { %v3023_v22 = vunpack.i.h.bf16 %v3021_v45  ;;  %v3022_v62 = vunpack.i.l.bf16 %v3021_v45 }
 0x170   : > { %v1552_v52 = vsel %vm1525_vm6, %v1519_v55, %v3027_v28  ;;  %v1553_v45 = vsel %vm1525_vm6, %v1520_v16, %v3028_v40 }
 0x171   : > { %v4377_v3 = vpop.permute.xlu1 %3035  ;;  %v1550_v58 = vsel %vm1525_vm6, %v1517_v42, %v3022_v62  ;;  %v1551_v31 = vsel %vm1525_vm6, %v1518_v29, %v3023_v22 }
 0x172   : > { %v3031_v51 = vpop.permute.xlu0 %3030  ;;  %v3038_v43 = vunpack.i.h.bf16 %v4377_v3  ;;  %v3037_v6 = vunpack.i.l.bf16 %v4377_v3 }
 0x173   : > { %v3033_v57 = vunpack.i.h.bf16 %v3031_v51  ;;  %v3032_v4 = vunpack.i.l.bf16 %v3031_v51 }
 0x174   : > { %v1585_v13 = vsel %vm1558_vm7, %v1552_v52, %v3037_v6  ;;  %v1586_v27 = vsel %vm1558_vm7, %v1553_v45, %v3038_v43 }
 0x175   : > { %v3046_v12 = vpop.permute.xlu1 %3045  ;;  %v1583_v21 = vsel %vm1558_vm7, %v1550_v58, %v3032_v4  ;;  %v1584_v60 = vsel %vm1558_vm7, %v1551_v31, %v3033_v57 }
 0x176   : > { %v3041_v23 = vpop.permute.xlu0 %3040  ;;  %v3048_v50 = vunpack.i.h.bf16 %v3046_v12  ;;  %v3047_v48 = vunpack.i.l.bf16 %v3046_v12 }
 0x177   : > { %v3043_v56 = vunpack.i.h.bf16 %v3041_v23  ;;  %v3042_v41 = vunpack.i.l.bf16 %v3041_v23 }
 0x178   : > { %v1618_v5 = vsel %vm1591_vm8, %v1585_v13, %v3047_v48  ;;  %v1619_v49 = vsel %vm1591_vm8, %v1586_v27, %v3048_v50 }
 0x179   : > { %v3056_v17 = vpop.permute.xlu1 %3055  ;;  %v1616_v15 = vsel %vm1591_vm8, %v1583_v21, %v3042_v41  ;;  %v1617_v7 = vsel %vm1591_vm8, %v1584_v60, %v3043_v56 }
 0x17a   : > { %v3051_v8 = vpop.permute.xlu0 %3050  ;;  %v3058_v30 = vunpack.i.h.bf16 %v3056_v17  ;;  %v3057_v44 = vunpack.i.l.bf16 %v3056_v17 }
 0x17b   : > { %v3053_v2 = vunpack.i.h.bf16 %v3051_v8  ;;  %v3052_v59 = vunpack.i.l.bf16 %v3051_v8 }
 0x17c   : > { %v1651_v1 = vsel %vm1624_vm9, %v1618_v5, %v3057_v44  ;;  %v1652_v39 = vsel %vm1624_vm9, %v1619_v49, %v3058_v30 }
 0x17d   : > { %v3066_v47 = vpop.permute.xlu1 %3065  ;;  %v1649_v32 = vsel %vm1624_vm9, %v1616_v15, %v3052_v59  ;;  %v1650_v9 = vsel %vm1624_vm9, %v1617_v7, %v3053_v2 }
 0x17e   : > { %v3061_v36 = vpop.permute.xlu0 %3060  ;;  %v3068_v22 = vunpack.i.h.bf16 %v3066_v47  ;;  %v3067_v62 = vunpack.i.l.bf16 %v3066_v47 }
 0x17f   : > { %v3063_v38 = vunpack.i.h.bf16 %v3061_v36  ;;  %v3062_v35 = vunpack.i.l.bf16 %v3061_v36 }
 0x180   : > { %v1456_v2 = vsel %vm1426_vm3, %v3955_v46, %v3068_v22  ;;  %v1455_v59 = vsel %vm1426_vm3, %v3953_v11, %v3067_v62 }
 0x181   : > { %v1682_v3 = vsel %vm1657_vm10, %v1649_v32, %v3062_v35  ;;  %v1683_v51 = vsel %vm1657_vm10, %v1650_v9, %v3063_v38  ;;  %v3076_v20 = vpop.permute.xlu1 %3075 }
 0x182   : > { %v1702_v34 = vpack.c.bf16 %v1683_v51, %v1682_v3  ;;  %v3071_v26 = vpop.permute.xlu0 %3070  ;;  %v3078_v37 = vunpack.i.h.bf16 %v3076_v20  ;;  %v3077_v24 = vunpack.i.l.bf16 %v3076_v20 }
 0x183   : > { %v3073_v53 = vunpack.i.h.bf16 %v3071_v26  ;;  %v3072_v12 = vunpack.i.l.bf16 %v3071_v26 }
 0x184   : > { %2374 = vmatprep.mubr.msk.bf16.mxu1 %vm1728_vm11, %v1702_v34  ;;  %v1458_v56 = vsel %vm1426_vm3, %v3980_v25, %v3078_v37  ;;  %v1457_v41 = vsel %vm1426_vm3, %v3978_v10, %v3077_v24 }
 0x185   : > { %v1685_v23 = vsel %vm1657_vm10, %v1652_v39, %v3073_v53  ;;  %v1684_v0 = vsel %vm1657_vm10, %v1651_v1, %v3072_v12  ;;  %v3086_v54 = vpop.permute.xlu1 %3085 }
 0x186   : > { %v1703_v18 = vpack.c.bf16 %v1685_v23, %v1684_v0  ;;  %v3081_v19 = vpop.permute.xlu0 %3080  ;;  %v3088_v17 = vunpack.i.h.bf16 %v3086_v54  ;;  %v3087_v55 = vunpack.i.l.bf16 %v3086_v54 }
 0x187   : > { %v3083_v57 = vunpack.i.h.bf16 %v3081_v19  ;;  %v3082_v4 = vunpack.i.l.bf16 %v3081_v19 }
 0x188   : > { %2375 = vmatmul.mubr.msk.bf16.gmra.mxu1 %vm1728_vm11, %v1703_v18  ;;  %v1490_v58 = vsel %vm1459_vm4, %v1457_v41, %v3087_v55  ;;  %v1491_v31 = vsel %vm1459_vm4, %v1458_v56, %v3088_v17  ;;  %v2028_v56 = vld [vmem:[%s3373_s10 + $0x70] sm:$0xff]  ;;  %v2027_v41 = vld [vmem:[%s3373_s10 + $0x68] sm:$0xff] }
 0x189   : > { %v3096_v33 = vpop.permute.xlu1 %3095  ;;  %v1489_v6 = vsel %vm1459_vm4, %v1456_v2, %v3083_v57  ;;  %v1488_v25 = vsel %vm1459_vm4, %v1455_v59, %v3082_v4  ;;  %v2024_v2 = vld [vmem:[%s3373_s10 + $0x50] sm:$0xff]  ;;  %v2023_v59 = vld [vmem:[%s3373_s10 + $0x48] sm:$0xff] }
 0x18a   : > { %v3091_v14 = vpop.permute.xlu0 %3090  ;;  %v3098_v42 = vunpack.i.h.bf16 %v3096_v33  ;;  %v3097_v29 = vunpack.i.l.bf16 %v3096_v33 }
 0x18b   : > { %v3093_v40 = vunpack.i.h.bf16 %v3091_v14  ;;  %v3092_v28 = vunpack.i.l.bf16 %v3091_v14 }
 0x18c   : > { %v1523_v60 = vsel %vm1492_vm5, %v1490_v58, %v3097_v29  ;;  %v1524_v50 = vsel %vm1492_vm5, %v1491_v31, %v3098_v42  ;;  %v2029_v42 = vld [vmem:[%s3373_s10 + $0x78] sm:$0xff]  ;;  %v3254_v29 = vmov 0.0   ;;  %v2022_v58 = vld [vmem:[%s3373_s10 + $0x40] sm:$0xff] }
 0x18d   : > { %v3106_v61 = vpop.permute.xlu1 %3105  ;;  %v1521_v11 = vsel %vm1492_vm5, %v1488_v25, %v3092_v28  ;;  %v1522_v36 = vsel %vm1492_vm5, %v1489_v6, %v3093_v40  ;;  %2382 = vmatprep.subr.mxu1 %v3254_v29  ;;  %v2026_v40 = vld [vmem:[%s3373_s10 + $0x60] sm:$0xff]  ;;  %v2025_v28 = vld [vmem:[%s3373_s10 + $0x58] sm:$0xff]  ;;  %v2019_v6 = vld [vmem:[%s3373_s10 + $0x28] sm:$0xff] }
 0x18e   : > { %v3101_v63 = vpop.permute.xlu0 %3100  ;;  %v3108_v47 = vunpack.i.h.bf16 %v3106_v61  ;;  %v3107_v21 = vunpack.i.l.bf16 %v3106_v61  ;;  %2383 = vmatpush3.msra.mxu1 %v2029_v42  ;;  %v2021_v31 = vld [vmem:[%s3373_s10 + $0x38] sm:$0xff]  ;;  %v2018_v25 = vld [vmem:[%s3373_s10 + $0x20] sm:$0xff] }
 0x18f   : > { %v3103_v46 = vunpack.i.h.bf16 %v3101_v63  ;;  %v3102_v48 = vunpack.i.l.bf16 %v3101_v63  ;;  %2384 = vmatprep.subr.mxu1 %v3254_v29 }
 0x190   : > { %v1556_v9 = vsel %vm1525_vm6, %v1523_v60, %v3107_v21  ;;  %v1557_v52 = vsel %vm1525_vm6, %v1524_v50, %v3108_v47  ;;  %2385 = vmatpush3.msra.mxu1 %v2028_v56  ;;  %v2017_v47 = vld [vmem:[%s3373_s10 + $0x18] sm:$0xff]  ;;  %v2016_v21 = vld [vmem:[%s3373_s10 + $0x10] sm:$0xff]  ;;  %v2352_v60 = vpop.f32.mrf.mxu0  ;;  %v2014_v50 = vld [vmem:[%s3373_s10] sm:$0xff] }
 0x191   : > { %v3116_v16 = vpop.permute.xlu1 %3115  ;;  %v1554_v20 = vsel %vm1525_vm6, %v1521_v11, %v3102_v48  ;;  %v1555_v13 = vsel %vm1525_vm6, %v1522_v36, %v3103_v46  ;;  %2386 = vmatprep.subr.mxu1 %v3254_v29 }
 0x192   : > { %v3111_v8 = vpop.permute.xlu0 %3110  ;;  %v3118_v15 = vunpack.i.h.bf16 %v3116_v16  ;;  %v3117_v7 = vunpack.i.l.bf16 %v3116_v16  ;;  %2387 = vmatpush3.msra.mxu1 %v2027_v41  ;;  %v1815_v46 = vpop.f32.mrf.mxu0 }
 0x193   : > { %v3113_v38 = vunpack.i.h.bf16 %v3111_v8  ;;  %v3112_v35 = vunpack.i.l.bf16 %v3111_v8  ;;  %2388 = vmatprep.subr.mxu1 %v3254_v29 }
 0x194   : > { %v1589_v26 = vsel %vm1558_vm7, %v1556_v9, %v3117_v7  ;;  %v1590_v5 = vsel %vm1558_vm7, %v1557_v52, %v3118_v15  ;;  %2389 = vmatpush3.msra.mxu1 %v2026_v40  ;;  %v2353_v48 = vpop.f32.mrf.mxu0  ;;  %v4480_v7 = vld [vmem:[%s296_s16] ss:$0 sm:$0xff] }
 0x195   : > { %v3126_v43 = vpop.permute.xlu1 %3125  ;;  %v1587_v12 = vsel %vm1558_vm7, %v1554_v20, %v3112_v35  ;;  %v1588_v1 = vsel %vm1558_vm7, %v1555_v13, %v3113_v38  ;;  %2390 = vmatprep.subr.mxu1 %v3254_v29  ;;  %v1824_v9 = vadd.f32 %v2352_v60, %v4480_v7  ;;  %v1827_v20 = vadd.f32 %v2353_v48, %v4480_v7 }
 0x196   : > { %v3121_v10 = vpop.permute.xlu0 %3120  ;;  %v3128_v30 = vunpack.i.h.bf16 %v3126_v43  ;;  %v3127_v44 = vunpack.i.l.bf16 %v3126_v43  ;;  %2391 = vmatpush3.msra.mxu1 %v2025_v28  ;;  %v2020_v43 = vld [vmem:[%s3373_s10 + $0x30] sm:$0xff]  ;;  %v1818_v11 = vpop.f32.mrf.mxu0 }
 0x197   : > { %v3123_v45 = vunpack.i.h.bf16 %v3121_v10  ;;  %v3122_v3 = vunpack.i.l.bf16 %v3121_v10  ;;  %2392 = vmatprep.subr.mxu1 %v3254_v29  ;;  %v2015_v10 = vld [vmem:[%s3373_s10 + $0x8] sm:$0xff]  ;;  %v1819_v38 = vadd.f32 %v4480_v7, %v1818_v11 }
 0x198   : > { %v1622_v39 = vsel %vm1591_vm8, %v1589_v26, %v3127_v44  ;;  %v1623_v23 = vsel %vm1591_vm8, %v1590_v5, %v3128_v30  ;;  %2393 = vmatpush3.msra.mxu1 %v2024_v2  ;;  %v1816_v30 = vadd.f32 %v4480_v7, %v1815_v46  ;;  %v1945_v5 = vmax.f32 %v1827_v20, 0.0 }
 0x199   : > { %v3136_v32 = vpop.permute.xlu1 %3135  ;;  %v1620_v54 = vsel %vm1591_vm8, %v1587_v12, %v3122_v3  ;;  %v1621_v18 = vsel %vm1591_vm8, %v1588_v1, %v3123_v45  ;;  %2394 = vmatprep.subr.mxu1 %v3254_v29  ;;  %v1943_v44 = vmax.f32 %v1819_v38, 0.0 }
 0x19a   : > { %v3131_v51 = vpop.permute.xlu0 %3130  ;;  %v3138_v27 = vunpack.i.h.bf16 %v3136_v32  ;;  %v3137_v34 = vunpack.i.l.bf16 %v3136_v32  ;;  %2395 = vmatpush3.msra.mxu1 %v2023_v59  ;;  %v1942_v52 = vmax.f32 %v1816_v30, 0.0 }
 0x19b   : > { %v3133_v49 = vunpack.i.h.bf16 %v3131_v51  ;;  %v3132_v53 = vunpack.i.l.bf16 %v3131_v51  ;;  %2396 = vmatprep.subr.mxu1 %v3254_v29  ;;  %v1944_v51 = vmax.f32 %v1824_v9, 0.0 }
 0x19c   : > { %v1655_v61 = vsel %vm1624_vm9, %v1622_v39, %v3137_v34  ;;  %v1656_v63 = vsel %vm1624_vm9, %v1623_v23, %v3138_v27  ;;  %2397 = vmatpush3.msra.mxu1 %v2022_v58  ;;  %v1974_v3 = vadd.f32 %v1943_v44, %v1942_v52 }
 0x19d   : > { %v3146_v0 = vpop.permute.xlu1 %3145  ;;  %v1653_v22 = vsel %vm1624_vm9, %v1620_v54, %v3132_v53  ;;  %v1654_v62 = vsel %vm1624_vm9, %v1621_v18, %v3133_v49  ;;  %2398 = vmatprep.subr.mxu1 %v3254_v29 }
 0x19e   : > { %v3148_v19 = vunpack.i.h.bf16 %v3146_v0  ;;  %v3147_v33 = vunpack.i.l.bf16 %v3146_v0  ;;  %v3141_v14 = vpop.permute.xlu0 %3140  ;;  %2399 = vmatpush3.msra.mxu1 %v2021_v31  ;;  %v1975_v34 = vadd.f32 %v1974_v3, %v1944_v51 }
 0x19f   : > { %v3143_v37 = vunpack.i.h.bf16 %v3141_v14  ;;  %v3142_v24 = vunpack.i.l.bf16 %v3141_v14  ;;  %2400 = vmatprep.subr.mxu1 %v3254_v29 }
 0x1a0   : > { %v1688_v17 = vsel %vm1657_vm10, %v1655_v61, %v3147_v33  ;;  %v1689_v55 = vsel %vm1657_vm10, %v1656_v63, %v3148_v19  ;;  %2401 = vmatpush3.msra.mxu1 %v2020_v43  ;;  %v1976_v12 = vadd.f32 %v1975_v34, %v1945_v5 }
 0x1a1   : > { %v1705_v16 = vpack.c.bf16 %v1689_v55, %v1688_v17  ;;  %v1686_v57 = vsel %vm1657_vm10, %v1653_v22, %v3142_v24  ;;  %v1687_v4 = vsel %vm1657_vm10, %v1654_v62, %v3143_v37  ;;  %2402 = vmatprep.subr.mxu1 %v3254_v29 }
 0x1a2   : > { %v1704_v8 = vpack.c.bf16 %v1687_v4, %v1686_v57  ;;  %2403 = vmatpush3.msra.mxu1 %v2019_v6 }
 0x1a3   : > { %2404 = vmatprep.subr.mxu1 %v3254_v29 }
 0x1a4   : > { %2378 = vmatprep.mubr.msk.bf16.mxu1 %vm1728_vm11, %v1704_v8  ;;  %2405 = vmatpush3.msra.mxu1 %v2018_v25 }
 0x1a5   : > { %2379 = vmatmul.mubr.msk.bf16.gmra.mxu1 %vm1728_vm11, %v1705_v16  ;;  %2406 = vmatprep.subr.mxu1 %v3254_v29 }
 0x1a6   : > { %2407 = vmatpush3.msra.mxu1 %v2017_v47  ;;  %2414 = vmatprep.mubr.msk.f32.mxu1 %vm3255_vm12, %v3254_v29 }
 0x1a7   : > { %2408 = vmatprep.subr.mxu1 %v3254_v29 }
 0x1a8   : > { %2409 = vmatpush3.msra.mxu1 %v2016_v21  ;;  %v2356_v36 = vpop.f32.mrf.mxu0 }
 0x1a9   : > { %2410 = vmatprep.subr.mxu1 %v3254_v29  ;;  %v1840_v39 = vadd.f32 %v2356_v36, %v4480_v7 }
 0x1aa   : > { %2411 = vmatpush3.msra.mxu1 %v2015_v10  ;;  %v1831_v15 = vpop.f32.mrf.mxu0 }
 0x1ab   : > { %2412 = vmatprep.subr.mxu1 %v3254_v29  ;;  %v1832_v13 = vadd.f32 %v4480_v7, %v1831_v15  ;;  %v1948_v19 = vmax.f32 %v1840_v39, 0.0 }
 0x1ac   : > { %2413 = vmatpush3.msra.mxu1 %v2014_v50  ;;  %v2357_v35 = vpop.f32.mrf.mxu0 }
 0x1ad   : > { %v1946_v49 = vmax.f32 %v1832_v13, 0.0  ;;  %v1843_v33 = vadd.f32 %v2357_v35, %v4480_v7 }
 0x1ae   : > { %v1834_v32 = vpop.f32.mrf.mxu0 }
 0x1af   : > { %v1835_v26 = vadd.f32 %v4480_v7, %v1834_v32  ;;  %v1977_v23 = vadd.f32 %v1976_v12, %v1946_v49  ;;  %v1949_v24 = vmax.f32 %v1843_v33, 0.0 }
 0x1b1   : > { %v1947_v1 = vmax.f32 %v1835_v26, 0.0 }
 0x1b3   : > { %v1978_v54 = vadd.f32 %v1977_v23, %v1947_v1 }
 0x1b5   : > { %v1979_v61 = vadd.f32 %v1978_v54, %v1948_v19 }
 0x1b7   : > { %v1980_v62 = vadd.f32 %v1979_v61, %v1949_v24 }
 0x1c8   : > { %v2360_v45 = vpop.f32.mrf.mxu0 }
 0x1c9   : > { %v1856_v57 = vadd.f32 %v2360_v45, %v4480_v7 }
 0x1ca   : > { %v1847_v27 = vpop.f32.mrf.mxu0 }
 0x1cb   : > { %v1848_v14 = vadd.f32 %v4480_v7, %v1847_v27  ;;  %v1952_v56 = vmax.f32 %v1856_v57, 0.0 }
 0x1cc   : > { %v2361_v53 = vpop.f32.mrf.mxu0 }
 0x1cd   : > { %v1950_v22 = vmax.f32 %v1848_v14, 0.0  ;;  %v1859_v41 = vadd.f32 %v2361_v53, %v4480_v7 }
 0x1ce   : > { %v1850_v0 = vpop.f32.mrf.mxu0 }
 0x1cf   : > { %v1851_v63 = vadd.f32 %v4480_v7, %v1850_v0  ;;  %v1981_v4 = vadd.f32 %v1980_v62, %v1950_v22  ;;  %v1953_v58 = vmax.f32 %v1859_v41, 0.0 }
 0x1d1   : > { %v1951_v17 = vmax.f32 %v1851_v63, 0.0 }
 0x1d3   : > { %v1982_v8 = vadd.f32 %v1981_v4, %v1951_v17 }
 0x1d5   : > { %v1983_v28 = vadd.f32 %v1982_v8, %v1952_v56 }
 0x1d7   : > { %v1984_v43 = vadd.f32 %v1983_v28, %v1953_v58 }
 0x1e8   : > { %v2364_v18 = vpop.f32.mrf.mxu0 }
 0x1e9   : > { %v1872_v47 = vadd.f32 %v2364_v18, %v4480_v7 }
 0x1ea   : > { %v1863_v37 = vpop.f32.mrf.mxu0 }
 0x1eb   : > { %v1864_v40 = vadd.f32 %v4480_v7, %v1863_v37  ;;  %v1956_v50 = vmax.f32 %v1872_v47, 0.0 }
 0x1ec   : > { %v2365_v55 = vpop.f32.mrf.mxu0 }
 0x1ed   : > { %v1954_v31 = vmax.f32 %v1864_v40, 0.0  ;;  %v1875_v46 = vadd.f32 %v2365_v55, %v4480_v7 }
 0x1ee   : > { %v1866_v42 = vpop.f32.mrf.mxu0 }
 0x1ef   : > { %v1867_v2 = vadd.f32 %v4480_v7, %v1866_v42  ;;  %v1985_v21 = vadd.f32 %v1984_v43, %v1954_v31  ;;  %v1957_v38 = vmax.f32 %v1875_v46, 0.0 }
 0x1f1   : > { %v1955_v6 = vmax.f32 %v1867_v2, 0.0 }
 0x1f3   : > { %v1986_v60 = vadd.f32 %v1985_v21, %v1955_v6 }
 0x1f5   : > { %v1987_v36 = vadd.f32 %v1986_v60, %v1956_v50 }
 0x1f7   : > { %v1988_v44 = vadd.f32 %v1987_v36, %v1957_v38 }
 0x208   : > { %v2368_v16 = vpop.f32.mrf.mxu1 }
 0x209   : > { %v1888_v9 = vadd.f32 %v2368_v16, %v4480_v7 }
 0x20a   : > { %v1879_v29 = vpop.f32.mrf.mxu1 }
 0x20b   : > { %v1880_v48 = vadd.f32 %v4480_v7, %v1879_v29  ;;  %v1960_v20 = vmax.f32 %v1888_v9, 0.0 }
 0x20c   : > { %v2369_v59 = vpop.f32.mrf.mxu1 }
 0x20d   : > { %v1958_v35 = vmax.f32 %v1880_v48, 0.0  ;;  %v1891_v13 = vadd.f32 %v2369_v59, %v4480_v7 }
 0x20e   : > { %v1882_v25 = vpop.f32.mrf.mxu1 }
 0x20f   : > { %v1883_v15 = vadd.f32 %v4480_v7, %v1882_v25  ;;  %v1989_v52 = vadd.f32 %v1988_v44, %v1958_v35  ;;  %v1961_v49 = vmax.f32 %v1891_v13, 0.0 }
 0x211   : > { %v1959_v32 = vmax.f32 %v1883_v15, 0.0 }
 0x213   : > { %v1990_v3 = vadd.f32 %v1989_v52, %v1959_v32 }
 0x215   : > { %v1991_v34 = vadd.f32 %v1990_v3, %v1960_v20 }
 0x217   : > { %v1992_v12 = vadd.f32 %v1991_v34, %v1961_v49 }
 0x228   : > { %v2372_v10 = vpop.f32.mrf.mxu1 }
 0x229   : > { %v1904_v23 = vadd.f32 %v2372_v10, %v4480_v7 }
 0x22a   : > { %v1895_v11 = vpop.f32.mrf.mxu1 }
 0x22b   : > { %v1896_v27 = vadd.f32 %v4480_v7, %v1895_v11  ;;  %v1964_v19 = vmax.f32 %v1904_v23, 0.0 }
 0x22c   : > { %v2373_v30 = vpop.f32.mrf.mxu1 }
 0x22d   : > { %v1962_v53 = vmax.f32 %v1896_v27, 0.0  ;;  %v1907_v33 = vadd.f32 %v2373_v30, %v4480_v7  ;;  %v2013_v30 = vld [vmem:[#allocation2] sm:$0x1] }
 0x22e   : > { %v1898_v45 = vpop.f32.mrf.mxu1 }
 0x22f   : > { %v1899_v26 = vadd.f32 %v4480_v7, %v1898_v45  ;;  %v1993_v0 = vadd.f32 %v1992_v12, %v1962_v53  ;;  %v1965_v37 = vmax.f32 %v1907_v33, 0.0 }
 0x231   : > { %v1963_v1 = vmax.f32 %v1899_v26, 0.0 }
 0x233   : > { %v1994_v54 = vadd.f32 %v1993_v0, %v1963_v1 }
 0x235   : > { %v1995_v61 = vadd.f32 %v1994_v54, %v1964_v19 }
 0x237   : > { %v1996_v22 = vadd.f32 %v1995_v61, %v1965_v37 }
 0x248   : > { %v2376_v51 = vpop.f32.mrf.mxu1 }
 0x249   : > { %v1920_v17 = vadd.f32 %v2376_v51, %v4480_v7 }
 0x24a   : > { %v1911_v5 = vpop.f32.mrf.mxu1 }
 0x24b   : > { %v1912_v14 = vadd.f32 %v4480_v7, %v1911_v5  ;;  %v1968_v4 = vmax.f32 %v1920_v17, 0.0 }
 0x24c   : > { %v2377_v39 = vpop.f32.mrf.mxu1 }
 0x24d   : > { %v1966_v24 = vmax.f32 %v1912_v14, 0.0  ;;  %v1923_v8 = vadd.f32 %v2377_v39, %v4480_v7 }
 0x24e   : > { %v1914_v18 = vpop.f32.mrf.mxu1 }
 0x24f   : > { %v1915_v63 = vadd.f32 %v4480_v7, %v1914_v18  ;;  %v1997_v55 = vadd.f32 %v1996_v22, %v1966_v24  ;;  %v1969_v40 = vmax.f32 %v1923_v8, 0.0 }
 0x251   : > { %v1967_v62 = vmax.f32 %v1915_v63, 0.0 }
 0x253   : > { %v1998_v16 = vadd.f32 %v1997_v55, %v1967_v62 }
 0x255   : > { %v1999_v29 = vadd.f32 %v1998_v16, %v1968_v4 }
 0x257   : > { %v2000_v58 = vadd.f32 %v1999_v29, %v1969_v40 }
 0x265   : > { %v2380_v57 = vpop.f32.mrf.mxu1 }
 0x266   : > { %v1936_v59 = vadd.f32 %v2380_v57, %v4480_v7 }
 0x267   : > { %v1927_v42 = vpop.f32.mrf.mxu1 }
 0x268   : > { %v1928_v56 = vadd.f32 %v4480_v7, %v1927_v42  ;;  %v1972_v47 = vmax.f32 %v1936_v59, 0.0 }
 0x269   : > { %v2381_v41 = vpop.f32.mrf.mxu1 }
 0x26a   : > { %v1970_v28 = vmax.f32 %v1928_v56, 0.0  ;;  %v1939_v6 = vadd.f32 %v2381_v41, %v4480_v7 }
 0x26b   : > { %v1930_v2 = vpop.f32.mrf.mxu1 }
 0x26c   : > { %v1931_v31 = vadd.f32 %v4480_v7, %v1930_v2  ;;  %v2001_v43 = vadd.f32 %v2000_v58, %v1970_v28  ;;  %v1973_v10 = vmax.f32 %v1939_v6, 0.0 }
 0x26e   : > { %v1971_v25 = vmax.f32 %v1931_v31, 0.0 }
 0x270   : > { %v2002_v21 = vadd.f32 %v2001_v43, %v1971_v25 }
 0x272   : > { %v2003_v60 = vadd.f32 %v2002_v21, %v1972_v47 }
 0x274   : > { %v2004_v50 = vadd.f32 %v2003_v60, %v1973_v10 }
 0x276   : > { %v2005_v46 = vrot.slane %v2004_v50, 4 }
 0x278   : > { %v2006_v48 = vadd.f32 %v2005_v46, %v2004_v50 }
 0x27a   : > { %v2007_v11 = vrot.slane %v2006_v48, 2 }
 0x27c   : > { %v2008_v36 = vadd.f32 %v2007_v11, %v2006_v48 }
 0x27e   : > { %v2009_v15 = vrot.slane %v2008_v36, 1 }
 0x280   : > { %v2010_v38 = vadd.f32 %v2009_v15, %v2008_v36 }
 0x282   : > { %v2012_v35 = vmul.f32 0.00390625, %v2010_v38 }
 0x284   : > { %2415 = vmatmul.mubr.f32.vlgmr.msra.gmra.mxu1 %v2012_v35 }
 0x343   : > { %2105 = sbr.rel (%p2259_p1) target bundleno = 848 (0x350), region = 48 }
 0x344   : > { %v2096_v44 = vpop.f32.mrf.mxu1 }
 0x345   : > { %v2100_v32 = vadd.f32 %v2096_v44, %v2013_v30 }
 0x346   : > { %v2416_v9 = vpop.f32.mrf.mxu1 }
 0x347   : > { %2101 = vst [vmem:[#allocation2] sm:$0x1] %v2100_v32 }
 0x34e   : > { %v2106_v7 = vld [vmem:[#allocation2] sm:$0x1] }
 0x34f   : > { %2107 = vst [vmem:[%s3387_s15] sm:$0x1] %v2106_v7 }
 0x350 PF: > { %s2260_s10 = sshll.u32 %s3232_s22, 4  ;;  %s2121_s14 = sshll.u32 %s3387_s15, 4  ;;  %s2122_s14 = int_to_ptr.vmem [resolvable:$true] %s2121_s14 }
 0x351   : > { %s2119_s8 = scalar_lea.hbm %s4568_s5, %s2260_s10  ;;  %s4584_s12 = sand.u32 1, %s3220_s19  }
 0x352   : > { %s2109_s26 = scalar_lea.sflag [#allocation4], %s4584_s12  ;;  %s3152_s7 = scalar_lea.vmem %s2122_s14, 16 }
 0x353   : > { %p3153_p2 = scmp.ne.s32.totalorder %s2122_s14, %s3152_s7  ;;  %s3256_s21 = smov [#allocation3]  }
 0x354   : > { %s3156_s20 = sshll.u32 %s3256_s21, 4  ;;  %s3157_s20 = int_to_ptr.vmem [resolvable:$false] %s3156_s20 }
 0x355   : > { %p3154_p4 = pnand %p3153_p2, %p3336_p3  ;;  %s3158_s23 = scalar_lea.vmem %s3157_s20, 32 }
 0x356   : > { %p3159_p6 = scmp.lt.s32.totalorder %s2122_s14, %s3157_s20  ;;  %p3160_p7 = scmp.lt.s32.totalorder %s3158_s23, %s3152_s7 }
 0x357   : > { %p3155_p5 = pneg %p3154_p4 }
 0x358   : > { %p3161_p8 = por %p3160_p7, %p3159_p6 }
 0x35a   : > { %p3162_p10 = pnand %p3161_p8, %p3155_p5 }
 0x35c   : > { %3165 = shalt.err (!%p3162_p10)
}
 0x35d   : > { %s3166_s22 = scalar_lea.hbm %s2119_s8, 16  ;;  %s3170_s28 = scalar_lea.hbm %s4568_s5, 32 }
 0x35e   : > { %p3167_p11 = scmp.ne.s32.totalorder %s2119_s8, %s3166_s22  ;;  %p3171_p0 = scmp.lt.s32.totalorder %s2119_s8, %s4568_s5 }
 0x35f   : > { %p3172_p1 = scmp.lt.s32.totalorder %s3170_s28, %s3166_s22 }
 0x360   : > { %p3168_p12 = pnand %p3167_p11, %p3336_p3 }
 0x361   : > { %p3173_p2 = por %p3172_p1, %p3171_p0 }
 0x362   : > { %p3169_p13 = pneg %p3168_p12 }
 0x364   : > { %p3174_p4 = pnand %p3173_p2, %p3169_p13 }
 0x366   : > { %3177 = shalt.err (!%p3174_p4)
}
 0x367   : > { %2428 = dma.vmem_to_hbm [thread:$0]  (%p3336_p3), %s2122_s14, 16, %s2119_s8, %s2109_s26  }
 0x368 PF: > { %p2434_p5 = scmp.ge.s32.totalorder %s3244_s25, 2  ;;  %s2133_s17 = sand.u32 1, %s3216_s18  }
 0x369   : > { %s2134_s9 = scalar_lea.sflag [#allocation4], %s2133_s17 }
 0x36a   : > { %p2431_p6 = pnand %p2434_p5, %p3346_p9 }
 0x36c   : > { %p2432_p7 = pneg %p2431_p6 }
 0x36e   : > { %3211 = dma.done.wait (%p2432_p7), %s2134_s9, 16  }
 0x36f   : > { %3213 = vsyncadd (%p2432_p7), %s2134_s9, 4294967280  ;;  %s18_s25 = sadd.s32 1, %s3244_s25   ;;  %s4586_s27 = sld [smem:[#allocation6_spill]] }
 0x370   : > { %p15_p8 = scmp.ge.s32.totalorder %s18_s25, 6   ;;  %s4587_s20 = sld [smem:[#allocation12_spill]] }
 0x371   : > { %s4588_s21 = sld [smem:[#allocation7_spill]]  ;;  %s4592_s18 = smov %s3220_s19 }
 0x372   : > { %s4589_s22 = sld [smem:[#allocation8_spill]]  ;;  %17 = sbr.rel (!%p15_p8) target bundleno = 5 (0x5), region = 92 }
 0x373   : > { %s4590_s23 = sld [smem:[#allocation9_spill]] }
 0x374   : > { %s4591_s24 = sld [smem:[#allocation10_spill]] }
 0x375   : > { %s4593_s19 = smov %s4586_s27 }
 0x377   :  { %2138 = vsyncpa [#allocation4], 1 }
 0x378   :  { %2140 = vsyncpa [#allocation4 + $0x1], 1 }

</bundles_post_ra>
